<compile_context>
chip_gen: v7x
topology: tpu7x:2x2x1
jax: 0.10.0
libtpu: 0.0.40
codegen_flags: <defaults>
</compile_context>

<pallas_src>
import functools

import numpy as np
import jax
import jax.numpy as jnp
from jax.experimental import pallas as pl
from jax.experimental.pallas import tpu as pltpu

EPS = 1e-5  # nn.BatchNorm2d default eps


def _round_up(v, m):
    return ((v + m - 1) // m) * m


# ------------------------------ fused kernel --------------------------------

def _fused_cnn_kernel(dims,
                      x_ref, w1_ref, b1_ref, w2_ref, b2_ref, s1_ref, s2_ref,
                      f1_ref, fb1_ref, f2_ref, fb2_ref, f3_ref, fb3_ref,
                      f4_ref, out_ref,
                      s_y1, s_z1, s_y2, s_feat):
    (N, K, W, Wp1, L1, L2, NV1, NV2, Pf) = dims
    f32 = jnp.float32
    C1 = b1_ref.shape[0]          # conv1 out channels (2C)
    C2 = b2_ref.shape[0]          # conv2 out channels (C)

    # ---- stage 1: conv1 + bias + ReLU as ONE matmul over a VMEM im2col -----
    # patches1[(kh*K+kw)*CinP + c, q] = x[c, q + kh*W + kw]  (q = n*H*W+h*W+w)
    wins = [x_ref[:, pl.ds(kh * W + kw, L1)]
            for kh in range(K) for kw in range(K)]
    patches1 = jnp.concatenate(wins, axis=0)                  # (K*K*CinP, L1)
    y1 = jnp.dot(w1_ref[...], patches1, preferred_element_type=f32)
    y1 = jnp.maximum(y1 + b1_ref[...], 0.0)                   # (C1, L1)

    # ---- pool1: max of 4 shifted full-width reads + 0/1 compaction matmul --
    pad1 = s_y1.shape[1] - L1
    s_y1[:, pl.ds(0, L1)] = y1
    s_y1[:, pl.ds(L1, pad1)] = jnp.zeros((C1, pad1), f32)     # keep reads finite
    m1 = jnp.maximum(
        jnp.maximum(s_y1[:, pl.ds(0, L1)], s_y1[:, pl.ds(1, L1)]),
        jnp.maximum(s_y1[:, pl.ds(W, L1)], s_y1[:, pl.ds(W + 1, L1)]))
    z1 = jnp.dot(m1, s1_ref[...], preferred_element_type=f32)  # (C1, L2)

    # ---- BN1 (training mode, biased variance, two-pass, masked) ------------
    lane2 = jax.lax.broadcasted_iota(jnp.int32, (1, L2), 1)
    v1 = (lane2 < NV1).astype(f32)
    mu1 = jnp.sum(z1, axis=1, keepdims=True) * (1.0 / NV1)
    d1 = (z1 - mu1) * v1
    var1 = jnp.sum(d1 * d1, axis=1, keepdims=True) * (1.0 / NV1)
    z1n = (z1 - mu1) * jax.lax.rsqrt(var1 + EPS)               # (C1, L2)

    # ---- stage 2: conv2 + bias + ReLU as ONE matmul over shifted windows ---
    pad2 = s_z1.shape[1] - L2
    s_z1[:, pl.ds(0, L2)] = z1n
    s_z1[:, pl.ds(L2, pad2)] = jnp.zeros((C1, pad2), f32)
    wins2 = [s_z1[:, pl.ds(kh * Wp1 + kw, L2)]
             for kh in range(K) for kw in range(K)]
    patches2 = jnp.concatenate(wins2, axis=0)                  # (K*K*C1, L2)
    y2 = jnp.dot(w2_ref[...], patches2, preferred_element_type=f32)
    y2 = jnp.maximum(y2 + b2_ref[...], 0.0)                    # (C2, L2)

    # ---- pool2 + compaction -------------------------------------------------
    pad3 = s_y2.shape[1] - L2
    s_y2[:, pl.ds(0, L2)] = y2
    s_y2[:, pl.ds(L2, pad3)] = jnp.zeros((C2, pad3), f32)
    m2 = jnp.maximum(
        jnp.maximum(s_y2[:, pl.ds(0, L2)], s_y2[:, pl.ds(1, L2)]),
        jnp.maximum(s_y2[:, pl.ds(Wp1, L2)], s_y2[:, pl.ds(Wp1 + 1, L2)]))
    z2 = jnp.dot(m2, s2_ref[...], preferred_element_type=f32)  # (C2, F2)

    # ---- BN2 (padded lanes of z2 are exactly zero by construction) ---------
    F2 = z2.shape[1]
    lanef = jax.lax.broadcasted_iota(jnp.int32, (1, F2), 1)
    v2 = (lanef < NV2).astype(f32)
    mu2 = jnp.sum(z2, axis=1, keepdims=True) * (1.0 / NV2)
    d2 = (z2 - mu2) * v2
    var2 = jnp.sum(d2 * d2, axis=1, keepdims=True) * (1.0 / NV2)
    z2n = (z2 - mu2) * jax.lax.rsqrt(var2 + EPS)               # (C2, F2)

    # ---- NCHW flatten: tiny sublane->lane transpose via C2*N slice stores --
    for c in range(C2):
        for n in range(N):
            s_feat[pl.ds(n, 1), pl.ds(c * Pf, Pf)] = \
                z2n[c:c + 1, n * Pf:(n + 1) * Pf]

    # ---- batched MLP: 4 matmuls, one dense output store ---------------------
    feat = s_feat[...]                                          # (N, C2*K*K)
    h = jnp.maximum(jnp.dot(feat, f1_ref[...],
                            preferred_element_type=f32) + fb1_ref[...], 0.0)
    h = jnp.maximum(jnp.dot(h, f2_ref[...],
                            preferred_element_type=f32) + fb2_ref[...], 0.0)
    h = jnp.maximum(jnp.dot(h, f3_ref[...],
                            preferred_element_type=f32) + fb3_ref[...], 0.0)
    out_ref[...] = jnp.dot(h, f4_ref[...], preferred_element_type=f32)


# ------------------------------ host wrapper ---------------------------------

def cnn_forward(x_nchw, p, K):
    x = x_nchw.astype(jnp.float32)
    N, Cin, H, W = x.shape
    C1 = p['conv1_b'].shape[0]
    C2 = p['conv2_b'].shape[0]

    H1, W1 = H - K + 1, W - K + 1
    assert H1 % 2 == 0 and W1 % 2 == 0
    Hp1, Wp1 = H1 // 2, W1 // 2
    H2, W2 = Hp1 - K + 1, Wp1 - K + 1
    assert H2 % 2 == 0 and W2 % 2 == 0
    Hf, Wf = H2 // 2, W2 // 2
    assert Hf * Wf == K * K, "module requires final spatial == kernel*kernel"
    assert C2 * Hf * Wf == p['fc1_w'].shape[0]

    CinP = _round_up(Cin, 8)                 # sublane-tile aligned im2col blocks
    G1, G2 = H * W, Hp1 * Wp1
    Pf = Hf * Wf
    L1 = _round_up(N * G1, 128)              # stage-1 pixel grid (lanes)
    L2 = _round_up(N * G2, 128)              # stage-2 pixel grid (lanes)
    XW = _round_up(L1 + (K - 1) * (W + 1), 128)
    NV1 = N * Hp1 * Wp1                      # BN1 population
    NV2 = N * Pf                             # BN2 population
    F2 = _round_up(NV2, 128)                 # compacted pool2 width

    # ---- trace-time input / weight re-layouts (tiny, fused by XLA) ----------
    xf = jnp.transpose(x, (1, 0, 2, 3)).reshape(Cin, N * G1)
    xf = jnp.pad(xf, ((0, CinP - Cin), (0, XW - N * G1)))      # zeros -> finite

    # conv weights -> (C_out, K*K*C_in_padded), row order (kh, kw, c)
    w1 = jnp.transpose(p['conv1_w'], (0, 2, 3, 1)).reshape(C1, K * K, Cin)
    w1 = jnp.pad(w1, ((0, 0), (0, 0), (0, CinP - Cin))).reshape(C1, K * K * CinP)
    w2 = jnp.transpose(p['conv2_w'], (0, 2, 3, 1)).reshape(C2, K * K * C1)

    # 0/1 selection matrices: 2x2-pool compaction as pure lane gathers (MXU).
    s1 = np.zeros((L1, L2), np.float32)
    for n in range(N):
        for hp in range(Hp1):
            for wp in range(Wp1):
                s1[n * G1 + 2 * hp * W + 2 * wp, n * G2 + hp * Wp1 + wp] = 1.0
    s2 = np.zeros((L2, F2), np.float32)
    for n in range(N):
        for hf in range(Hf):
            for wf in range(Wf):
                s2[n * G2 + 2 * hf * Wp1 + 2 * wf, n * Pf + hf * Wf + wf] = 1.0

    dims = (N, K, W, Wp1, L1, L2, NV1, NV2, Pf)
    kernel = functools.partial(_fused_cnn_kernel, dims)
    n_in = 14
    in_specs = [pl.BlockSpec(memory_space=pltpu.MemorySpace.VMEM)] * n_in

    return pl.pallas_call(
        kernel,
        out_shape=jax.ShapeDtypeStruct((N, 1), jnp.float32),
        in_specs=in_specs,
        out_specs=pl.BlockSpec(memory_space=pltpu.MemorySpace.VMEM),
        scratch_shapes=[
            pltpu.VMEM((C1, L1 + 128), jnp.float32),   # s_y1: conv1 grid
            pltpu.VMEM((C1, L2 + 128), jnp.float32),   # s_z1: BN1'd pool1 grid
            pltpu.VMEM((C2, L2 + 128), jnp.float32),   # s_y2: conv2 grid
            pltpu.VMEM((N, C2 * Pf), jnp.float32),     # s_feat: flattened MLP in
        ],
    )(xf, w1, p['conv1_b'][:, None], w2, p['conv2_b'][:, None],
      jnp.asarray(s1), jnp.asarray(s2),
      p['fc1_w'], p['fc1_b'][None, :],
      p['fc2_w'], p['fc2_b'][None, :],
      p['fc3_w'], p['fc3_b'][None, :],
      p['fc4_w'])


# -------------------- deterministic synthetic parameters --------------------

def init_params(key, C, K, FW):
    ks = jax.random.split(key, 11)
    rn = lambda k, s: 0.1 * jax.random.normal(k, s, dtype=jnp.float32)
    return {
        'conv1_w': rn(ks[0], (2 * C, C, K, K)),   # PyTorch OIHW layout
        'conv1_b': rn(ks[1], (2 * C,)),
        'conv2_w': rn(ks[2], (C, 2 * C, K, K)),
        'conv2_b': rn(ks[3], (C,)),
        'fc1_w':   rn(ks[4], (C * K * K, FW)),    # stored as (in, out)
        'fc1_b':   rn(ks[5], (FW,)),
        'fc2_w':   rn(ks[6], (FW, FW)),
        'fc2_b':   rn(ks[7], (FW,)),
        'fc3_w':   rn(ks[8], (FW, FW)),
        'fc3_b':   rn(ks[9], (FW,)),
        'fc4_w':   rn(ks[10], (FW, 1)),           # fc4 has no bias
    }


# ------------------------- pure-JAX reference check -------------------------

def cnn_reference(x, p, K):
    def conv(x, w, b):
        y = jax.lax.conv_general_dilated(
            x, w, (1, 1), 'VALID', dimension_numbers=('NCHW', 'OIHW', 'NCHW'))
        return y + b[None, :, None, None]

    def pool(x):
        return jax.lax.reduce_window(x, -jnp.inf, jax.lax.max,
                                     (1, 1, 2, 2), (1, 1, 2, 2), 'VALID')

    def bn(x):
        mu = jnp.mean(x, axis=(0, 2, 3), keepdims=True)
        var = jnp.mean((x - mu) ** 2, axis=(0, 2, 3), keepdims=True)
        return (x - mu) * jax.lax.rsqrt(var + EPS)

    x = x.astype(jnp.float32)
    y = bn(pool(jnp.maximum(conv(x, p['conv1_w'], p['conv1_b']), 0.0)))
    y = bn(pool(jnp.maximum(conv(y, p['conv2_w'], p['conv2_b']), 0.0)))
    y = y.reshape(y.shape[0], -1)
    y = jnp.maximum(y @ p['fc1_w'] + p['fc1_b'], 0.0)
    y = jnp.maximum(y @ p['fc2_w'] + p['fc2_b'], 0.0)
    y = jnp.maximum(y @ p['fc3_w'] + p['fc3_b'], 0.0)
    return y @ p['fc4_w']


if __name__ == "__main__":
    # num_features=4, kernel=3, forward_width=32.
    # Spatial 18 -> conv3 16 -> pool 8 -> conv3 6 -> pool 3 == kernel, so the
    # flatten view(-1, C*K*K) in the original module is consistent.
    N, C, K, FW = 2, 4, 3, 32
    H = W = 18

    key = jax.random.PRNGKey(0)
    kx, kp = jax.random.split(key)
    x = jax.random.normal(kx, (N, C, H, W), dtype=jnp.float32)
    params = init_params(kp, C, K, FW)

    out = cnn_forward(x, params, K)
    out = jax.block_until_ready(out)
    assert out.shape == (N, 1)

    ref = cnn_reference(x, params, K)
    np.testing.assert_allclose(np.asarray(out), np.asarray(ref),
                               rtol=5e-3, atol=2e-3)
    print("KERNEL_OK")
</pallas_src>

<mosaic_0001>
module attributes {stable_mosaic.version = 11 : i64} {
  func.func @_fused_cnn_kernel(%arg0: memref<8x896xf32, #tpu.memory_space<vmem>>, %arg1: memref<8x72xf32, #tpu.memory_space<vmem>>, %arg2: memref<8x1xf32, #tpu.memory_space<vmem>>, %arg3: memref<4x72xf32, #tpu.memory_space<vmem>>, %arg4: memref<4x1xf32, #tpu.memory_space<vmem>>, %arg5: memref<768x128xf32, #tpu.memory_space<vmem>>, %arg6: memref<128x128xf32, #tpu.memory_space<vmem>>, %arg7: memref<36x32xf32, #tpu.memory_space<vmem>>, %arg8: memref<1x32xf32, #tpu.memory_space<vmem>>, %arg9: memref<32x32xf32, #tpu.memory_space<vmem>>, %arg10: memref<1x32xf32, #tpu.memory_space<vmem>>, %arg11: memref<32x32xf32, #tpu.memory_space<vmem>>, %arg12: memref<1x32xf32, #tpu.memory_space<vmem>>, %arg13: memref<32x1xf32, #tpu.memory_space<vmem>>, %arg14: memref<2x1xf32, #tpu.memory_space<vmem>>, %arg15: memref<8x896xf32, #tpu.memory_space<vmem>>, %arg16: memref<8x256xf32, #tpu.memory_space<vmem>>, %arg17: memref<4x256xf32, #tpu.memory_space<vmem>>, %arg18: memref<2x36xf32, #tpu.memory_space<vmem>>) attributes {dimension_semantics = [], scalar_prefetch = 0 : i64, scratch_operands = 4 : i64, tpu.core_type = #tpu.core_type<tc>} {
    %c0 = arith.constant 0 : index
    %c0_0 = arith.constant 0 : index
    %0 = vector.load %arg0[%c0, %c0_0] : memref<8x896xf32, #tpu.memory_space<vmem>>, vector<8x768xf32>
    %c0_1 = arith.constant 0 : index
    %c1 = arith.constant 1 : index
    %1 = vector.load %arg0[%c0_1, %c1] : memref<8x896xf32, #tpu.memory_space<vmem>>, vector<8x768xf32>
    %c0_2 = arith.constant 0 : index
    %c2 = arith.constant 2 : index
    %2 = vector.load %arg0[%c0_2, %c2] : memref<8x896xf32, #tpu.memory_space<vmem>>, vector<8x768xf32>
    %c0_3 = arith.constant 0 : index
    %c18 = arith.constant 18 : index
    %3 = vector.load %arg0[%c0_3, %c18] : memref<8x896xf32, #tpu.memory_space<vmem>>, vector<8x768xf32>
    %c0_4 = arith.constant 0 : index
    %c19 = arith.constant 19 : index
    %4 = vector.load %arg0[%c0_4, %c19] : memref<8x896xf32, #tpu.memory_space<vmem>>, vector<8x768xf32>
    %c0_5 = arith.constant 0 : index
    %c20 = arith.constant 20 : index
    %5 = vector.load %arg0[%c0_5, %c20] : memref<8x896xf32, #tpu.memory_space<vmem>>, vector<8x768xf32>
    %c0_6 = arith.constant 0 : index
    %c36 = arith.constant 36 : index
    %6 = vector.load %arg0[%c0_6, %c36] : memref<8x896xf32, #tpu.memory_space<vmem>>, vector<8x768xf32>
    %c0_7 = arith.constant 0 : index
    %c37 = arith.constant 37 : index
    %7 = vector.load %arg0[%c0_7, %c37] : memref<8x896xf32, #tpu.memory_space<vmem>>, vector<8x768xf32>
    %c0_8 = arith.constant 0 : index
    %c38 = arith.constant 38 : index
    %8 = vector.load %arg0[%c0_8, %c38] : memref<8x896xf32, #tpu.memory_space<vmem>>, vector<8x768xf32>
    %9 = tpu.concatenate %0, %1, %2, %3, %4, %5, %6, %7, %8 in 0 : vector<8x768xf32>, vector<8x768xf32>, vector<8x768xf32>, vector<8x768xf32>, vector<8x768xf32>, vector<8x768xf32>, vector<8x768xf32>, vector<8x768xf32>, vector<8x768xf32> -> vector<72x768xf32>
    %c0_9 = arith.constant 0 : index
    %c0_10 = arith.constant 0 : index
    %10 = vector.load %arg1[%c0_9, %c0_10] : memref<8x72xf32, #tpu.memory_space<vmem>>, vector<8x72xf32>
    %cst = arith.constant dense<0.000000e+00> : vector<8x768xf32>
    %11 = tpu.matmul %10, %9, %cst {dimension_numbers = #tpu.dot_dimension_numbers<[1], [0], [0], [1], [0, 0, 1, 1], [], []>} : vector<8x72xf32>, vector<72x768xf32>, vector<8x768xf32> -> vector<8x768xf32>
    %c0_11 = arith.constant 0 : index
    %c0_12 = arith.constant 0 : index
    %12 = vector.load %arg2[%c0_11, %c0_12] : memref<8x1xf32, #tpu.memory_space<vmem>>, vector<8x1xf32>
    %13 = vector.broadcast %12 : vector<8x1xf32> to vector<8x768xf32>
    %14 = arith.addf %11, %13 : vector<8x768xf32>
    %cst_13 = arith.constant 0.000000e+00 : f32
    %15 = vector.broadcast %cst_13 : f32 to vector<8x768xf32>
    %16 = arith.maximumf %14, %15 : vector<8x768xf32>
    %c0_14 = arith.constant 0 : index
    %c0_15 = arith.constant 0 : index
    %17 = vector.load %arg15[%c0_14, %c0_15] : memref<8x896xf32, #tpu.memory_space<vmem>>, vector<8x768xf32>
    tpu.vector_store %arg15[%c0_14, %c0_15], %16 {strides = array<i32>} : memref<8x896xf32, #tpu.memory_space<vmem>>, vector<8x768xf32>,
    %cst_16 = arith.constant 0.000000e+00 : f32
    %18 = vector.broadcast %cst_16 : f32 to vector<8x128xf32>
    %c0_17 = arith.constant 0 : index
    %c768 = arith.constant 768 : index
    %19 = vector.load %arg15[%c0_17, %c768] : memref<8x896xf32, #tpu.memory_space<vmem>>, vector<8x128xf32>
    tpu.vector_store %arg15[%c0_17, %c768], %18 {strides = array<i32>} : memref<8x896xf32, #tpu.memory_space<vmem>>, vector<8x128xf32>,
    %c0_18 = arith.constant 0 : index
    %c0_19 = arith.constant 0 : index
    %20 = vector.load %arg15[%c0_18, %c0_19] : memref<8x896xf32, #tpu.memory_space<vmem>>, vector<8x768xf32>
    %c0_20 = arith.constant 0 : index
    %c1_21 = arith.constant 1 : index
    %21 = vector.load %arg15[%c0_20, %c1_21] : memref<8x896xf32, #tpu.memory_space<vmem>>, vector<8x768xf32>
    %22 = arith.maximumf %20, %21 : vector<8x768xf32>
    %c0_22 = arith.constant 0 : index
    %c18_23 = arith.constant 18 : index
    %23 = vector.load %arg15[%c0_22, %c18_23] : memref<8x896xf32, #tpu.memory_space<vmem>>, vector<8x768xf32>
    %c0_24 = arith.constant 0 : index
    %c19_25 = arith.constant 19 : index
    %24 = vector.load %arg15[%c0_24, %c19_25] : memref<8x896xf32, #tpu.memory_space<vmem>>, vector<8x768xf32>
    %25 = arith.maximumf %23, %24 : vector<8x768xf32>
    %26 = arith.maximumf %22, %25 : vector<8x768xf32>
    %c0_26 = arith.constant 0 : index
    %c0_27 = arith.constant 0 : index
    %27 = vector.load %arg5[%c0_26, %c0_27] : memref<768x128xf32, #tpu.memory_space<vmem>>, vector<768x128xf32>
    %cst_28 = arith.constant dense<0.000000e+00> : vector<8x128xf32>
    %28 = tpu.matmul %26, %27, %cst_28 {dimension_numbers = #tpu.dot_dimension_numbers<[1], [0], [0], [1], [0, 0, 1, 1], [], []>} : vector<8x768xf32>, vector<768x128xf32>, vector<8x128xf32> -> vector<8x128xf32>
    %29 = tpu.iota {dimensions = array<i32: 1>} : vector<1x128xi32>
    %c128_i32 = arith.constant 128 : i32
    %30 = vector.broadcast %c128_i32 : i32 to vector<1x128xi32>
    %31 = arith.cmpi slt, %29, %30 : vector<1x128xi32>
    %32 = arith.extui %31 : vector<1x128xi1> to vector<1x128xi32>
    %33 = arith.sitofp %32 : vector<1x128xi32> to vector<1x128xf32>
    %cst_29 = arith.constant dense<0.000000e+00> : vector<8xf32>
    %34 = vector.multi_reduction <add>, %28, %cst_29 [1] : vector<8x128xf32> to vector<8xf32>
    %35 = vector.shape_cast %34 : vector<8xf32> to vector<8x1xf32>
    %cst_30 = arith.constant 7.812500e-03 : f32
    %36 = vector.broadcast %cst_30 : f32 to vector<8x1xf32>
    %37 = arith.mulf %35, %36 : vector<8x1xf32>
    %38 = vector.broadcast %37 : vector<8x1xf32> to vector<8x128xf32>
    %39 = arith.subf %28, %38 : vector<8x128xf32>
    %40 = vector.broadcast %33 : vector<1x128xf32> to vector<8x128xf32>
    %41 = arith.mulf %39, %40 : vector<8x128xf32>
    %42 = arith.mulf %41, %41 : vector<8x128xf32>
    %cst_31 = arith.constant dense<0.000000e+00> : vector<8xf32>
    %43 = vector.multi_reduction <add>, %42, %cst_31 [1] : vector<8x128xf32> to vector<8xf32>
    %44 = vector.shape_cast %43 : vector<8xf32> to vector<8x1xf32>
    %cst_32 = arith.constant 7.812500e-03 : f32
    %45 = vector.broadcast %cst_32 : f32 to vector<8x1xf32>
    %46 = arith.mulf %44, %45 : vector<8x1xf32>
    %47 = vector.broadcast %37 : vector<8x1xf32> to vector<8x128xf32>
    %48 = arith.subf %28, %47 : vector<8x128xf32>
    %cst_33 = arith.constant 9.99999974E-6 : f32
    %49 = vector.broadcast %cst_33 : f32 to vector<8x1xf32>
    %50 = arith.addf %46, %49 : vector<8x1xf32>
    %51 = math.rsqrt %50 : vector<8x1xf32>
    %52 = vector.broadcast %51 : vector<8x1xf32> to vector<8x128xf32>
    %53 = arith.mulf %48, %52 : vector<8x128xf32>
    %c0_34 = arith.constant 0 : index
    %c0_35 = arith.constant 0 : index
    %54 = vector.load %arg16[%c0_34, %c0_35] : memref<8x256xf32, #tpu.memory_space<vmem>>, vector<8x128xf32>
    tpu.vector_store %arg16[%c0_34, %c0_35], %53 {strides = array<i32>} : memref<8x256xf32, #tpu.memory_space<vmem>>, vector<8x128xf32>,
    %cst_36 = arith.constant 0.000000e+00 : f32
    %55 = vector.broadcast %cst_36 : f32 to vector<8x128xf32>
    %c0_37 = arith.constant 0 : index
    %c128 = arith.constant 128 : index
    %56 = vector.load %arg16[%c0_37, %c128] : memref<8x256xf32, #tpu.memory_space<vmem>>, vector<8x128xf32>
    tpu.vector_store %arg16[%c0_37, %c128], %55 {strides = array<i32>} : memref<8x256xf32, #tpu.memory_space<vmem>>, vector<8x128xf32>,
    %c0_38 = arith.constant 0 : index
    %c0_39 = arith.constant 0 : index
    %57 = vector.load %arg16[%c0_38, %c0_39] : memref<8x256xf32, #tpu.memory_space<vmem>>, vector<8x128xf32>
    %c0_40 = arith.constant 0 : index
    %c1_41 = arith.constant 1 : index
    %58 = vector.load %arg16[%c0_40, %c1_41] : memref<8x256xf32, #tpu.memory_space<vmem>>, vector<8x128xf32>
    %c0_42 = arith.constant 0 : index
    %c2_43 = arith.constant 2 : index
    %59 = vector.load %arg16[%c0_42, %c2_43] : memref<8x256xf32, #tpu.memory_space<vmem>>, vector<8x128xf32>
    %c0_44 = arith.constant 0 : index
    %c8 = arith.constant 8 : index
    %60 = vector.load %arg16[%c0_44, %c8] : memref<8x256xf32, #tpu.memory_space<vmem>>, vector<8x128xf32>
    %c0_45 = arith.constant 0 : index
    %c9 = arith.constant 9 : index
    %61 = vector.load %arg16[%c0_45, %c9] : memref<8x256xf32, #tpu.memory_space<vmem>>, vector<8x128xf32>
    %c0_46 = arith.constant 0 : index
    %c10 = arith.constant 10 : index
    %62 = vector.load %arg16[%c0_46, %c10] : memref<8x256xf32, #tpu.memory_space<vmem>>, vector<8x128xf32>
    %c0_47 = arith.constant 0 : index
    %c16 = arith.constant 16 : index
    %63 = vector.load %arg16[%c0_47, %c16] : memref<8x256xf32, #tpu.memory_space<vmem>>, vector<8x128xf32>
    %c0_48 = arith.constant 0 : index
    %c17 = arith.constant 17 : index
    %64 = vector.load %arg16[%c0_48, %c17] : memref<8x256xf32, #tpu.memory_space<vmem>>, vector<8x128xf32>
    %c0_49 = arith.constant 0 : index
    %c18_50 = arith.constant 18 : index
    %65 = vector.load %arg16[%c0_49, %c18_50] : memref<8x256xf32, #tpu.memory_space<vmem>>, vector<8x128xf32>
    %66 = tpu.concatenate %57, %58, %59, %60, %61, %62, %63, %64, %65 in 0 : vector<8x128xf32>, vector<8x128xf32>, vector<8x128xf32>, vector<8x128xf32>, vector<8x128xf32>, vector<8x128xf32>, vector<8x128xf32>, vector<8x128xf32>, vector<8x128xf32> -> vector<72x128xf32>
    %c0_51 = arith.constant 0 : index
    %c0_52 = arith.constant 0 : index
    %67 = vector.load %arg3[%c0_51, %c0_52] : memref<4x72xf32, #tpu.memory_space<vmem>>, vector<4x72xf32>
    %cst_53 = arith.constant dense<0.000000e+00> : vector<4x128xf32>
    %68 = tpu.matmul %67, %66, %cst_53 {dimension_numbers = #tpu.dot_dimension_numbers<[1], [0], [0], [1], [0, 0, 1, 1], [], []>} : vector<4x72xf32>, vector<72x128xf32>, vector<4x128xf32> -> vector<4x128xf32>
    %c0_54 = arith.constant 0 : index
    %c0_55 = arith.constant 0 : index
    %69 = vector.load %arg4[%c0_54, %c0_55] : memref<4x1xf32, #tpu.memory_space<vmem>>, vector<4x1xf32>
    %70 = vector.broadcast %69 : vector<4x1xf32> to vector<4x128xf32>
    %71 = arith.addf %68, %70 : vector<4x128xf32>
    %cst_56 = arith.constant 0.000000e+00 : f32
    %72 = vector.broadcast %cst_56 : f32 to vector<4x128xf32>
    %73 = arith.maximumf %71, %72 : vector<4x128xf32>
    %c0_57 = arith.constant 0 : index
    %c0_58 = arith.constant 0 : index
    %74 = vector.load %arg17[%c0_57, %c0_58] : memref<4x256xf32, #tpu.memory_space<vmem>>, vector<4x128xf32>
    tpu.vector_store %arg17[%c0_57, %c0_58], %73 {strides = array<i32>} : memref<4x256xf32, #tpu.memory_space<vmem>>, vector<4x128xf32>,
    %cst_59 = arith.constant 0.000000e+00 : f32
    %75 = vector.broadcast %cst_59 : f32 to vector<4x128xf32>
    %c0_60 = arith.constant 0 : index
    %c128_61 = arith.constant 128 : index
    %76 = vector.load %arg17[%c0_60, %c128_61] : memref<4x256xf32, #tpu.memory_space<vmem>>, vector<4x128xf32>
    tpu.vector_store %arg17[%c0_60, %c128_61], %75 {strides = array<i32>} : memref<4x256xf32, #tpu.memory_space<vmem>>, vector<4x128xf32>,
    %c0_62 = arith.constant 0 : index
    %c0_63 = arith.constant 0 : index
    %77 = vector.load %arg17[%c0_62, %c0_63] : memref<4x256xf32, #tpu.memory_space<vmem>>, vector<4x128xf32>
    %c0_64 = arith.constant 0 : index
    %c1_65 = arith.constant 1 : index
    %78 = vector.load %arg17[%c0_64, %c1_65] : memref<4x256xf32, #tpu.memory_space<vmem>>, vector<4x128xf32>
    %79 = arith.maximumf %77, %78 : vector<4x128xf32>
    %c0_66 = arith.constant 0 : index
    %c8_67 = arith.constant 8 : index
    %80 = vector.load %arg17[%c0_66, %c8_67] : memref<4x256xf32, #tpu.memory_space<vmem>>, vector<4x128xf32>
    %c0_68 = arith.constant 0 : index
    %c9_69 = arith.constant 9 : index
    %81 = vector.load %arg17[%c0_68, %c9_69] : memref<4x256xf32, #tpu.memory_space<vmem>>, vector<4x128xf32>
    %82 = arith.maximumf %80, %81 : vector<4x128xf32>
    %83 = arith.maximumf %79, %82 : vector<4x128xf32>
    %c0_70 = arith.constant 0 : index
    %c0_71 = arith.constant 0 : index
    %84 = vector.load %arg6[%c0_70, %c0_71] : memref<128x128xf32, #tpu.memory_space<vmem>>, vector<128x128xf32>
    %cst_72 = arith.constant dense<0.000000e+00> : vector<4x128xf32>
    %85 = tpu.matmul %83, %84, %cst_72 {dimension_numbers = #tpu.dot_dimension_numbers<[1], [0], [0], [1], [0, 0, 1, 1], [], []>} : vector<4x128xf32>, vector<128x128xf32>, vector<4x128xf32> -> vector<4x128xf32>
    %86 = tpu.iota {dimensions = array<i32: 1>} : vector<1x128xi32>
    %c18_i32 = arith.constant 18 : i32
    %87 = vector.broadcast %c18_i32 : i32 to vector<1x128xi32>
    %88 = arith.cmpi slt, %86, %87 : vector<1x128xi32>
    %89 = arith.extui %88 : vector<1x128xi1> to vector<1x128xi32>
    %90 = arith.sitofp %89 : vector<1x128xi32> to vector<1x128xf32>
    %cst_73 = arith.constant dense<0.000000e+00> : vector<4xf32>
    %91 = vector.multi_reduction <add>, %85, %cst_73 [1] : vector<4x128xf32> to vector<4xf32>
    %92 = vector.shape_cast %91 : vector<4xf32> to vector<4x1xf32>
    %cst_74 = arith.constant 0.055555556 : f32
    %93 = vector.broadcast %cst_74 : f32 to vector<4x1xf32>
    %94 = arith.mulf %92, %93 : vector<4x1xf32>
    %95 = vector.broadcast %94 : vector<4x1xf32> to vector<4x128xf32>
    %96 = arith.subf %85, %95 : vector<4x128xf32>
    %97 = vector.broadcast %90 : vector<1x128xf32> to vector<4x128xf32>
    %98 = arith.mulf %96, %97 : vector<4x128xf32>
    %99 = arith.mulf %98, %98 : vector<4x128xf32>
    %cst_75 = arith.constant dense<0.000000e+00> : vector<4xf32>
    %100 = vector.multi_reduction <add>, %99, %cst_75 [1] : vector<4x128xf32> to vector<4xf32>
    %101 = vector.shape_cast %100 : vector<4xf32> to vector<4x1xf32>
    %cst_76 = arith.constant 0.055555556 : f32
    %102 = vector.broadcast %cst_76 : f32 to vector<4x1xf32>
    %103 = arith.mulf %101, %102 : vector<4x1xf32>
    %104 = vector.broadcast %94 : vector<4x1xf32> to vector<4x128xf32>
    %105 = arith.subf %85, %104 : vector<4x128xf32>
    %cst_77 = arith.constant 9.99999974E-6 : f32
    %106 = vector.broadcast %cst_77 : f32 to vector<4x1xf32>
    %107 = arith.addf %103, %106 : vector<4x1xf32>
    %108 = math.rsqrt %107 : vector<4x1xf32>
    %109 = vector.broadcast %108 : vector<4x1xf32> to vector<4x128xf32>
    %110 = arith.mulf %105, %109 : vector<4x128xf32>
    %111 = vector.extract_strided_slice %110 {offsets = [0, 0], sizes = [1, 9], strides = [1, 1]} : vector<4x128xf32> to vector<1x9xf32>
    %c0_78 = arith.constant 0 : index
    %c0_79 = arith.constant 0 : index
    %112 = vector.load %arg18[%c0_78, %c0_79] : memref<2x36xf32, #tpu.memory_space<vmem>>, vector<1x9xf32>
    tpu.vector_store %arg18[%c0_78, %c0_79], %111 {strides = array<i32>} : memref<2x36xf32, #tpu.memory_space<vmem>>, vector<1x9xf32>,
    %113 = vector.extract_strided_slice %110 {offsets = [0, 9], sizes = [1, 9], strides = [1, 1]} : vector<4x128xf32> to vector<1x9xf32>
    %c1_80 = arith.constant 1 : index
    %c0_81 = arith.constant 0 : index
    %114 = vector.load %arg18[%c1_80, %c0_81] : memref<2x36xf32, #tpu.memory_space<vmem>>, vector<1x9xf32>
    tpu.vector_store %arg18[%c1_80, %c0_81], %113 {strides = array<i32>} : memref<2x36xf32, #tpu.memory_space<vmem>>, vector<1x9xf32>,
    %115 = vector.extract_strided_slice %110 {offsets = [1, 0], sizes = [1, 9], strides = [1, 1]} : vector<4x128xf32> to vector<1x9xf32>
    %c0_82 = arith.constant 0 : index
    %c9_83 = arith.constant 9 : index
    %116 = vector.load %arg18[%c0_82, %c9_83] : memref<2x36xf32, #tpu.memory_space<vmem>>, vector<1x9xf32>
    tpu.vector_store %arg18[%c0_82, %c9_83], %115 {strides = array<i32>} : memref<2x36xf32, #tpu.memory_space<vmem>>, vector<1x9xf32>,
    %117 = vector.extract_strided_slice %110 {offsets = [1, 9], sizes = [1, 9], strides = [1, 1]} : vector<4x128xf32> to vector<1x9xf32>
    %c1_84 = arith.constant 1 : index
    %c9_85 = arith.constant 9 : index
    %118 = vector.load %arg18[%c1_84, %c9_85] : memref<2x36xf32, #tpu.memory_space<vmem>>, vector<1x9xf32>
    tpu.vector_store %arg18[%c1_84, %c9_85], %117 {strides = array<i32>} : memref<2x36xf32, #tpu.memory_space<vmem>>, vector<1x9xf32>,
    %119 = vector.extract_strided_slice %110 {offsets = [2, 0], sizes = [1, 9], strides = [1, 1]} : vector<4x128xf32> to vector<1x9xf32>
    %c0_86 = arith.constant 0 : index
    %c18_87 = arith.constant 18 : index
    %120 = vector.load %arg18[%c0_86, %c18_87] : memref<2x36xf32, #tpu.memory_space<vmem>>, vector<1x9xf32>
    tpu.vector_store %arg18[%c0_86, %c18_87], %119 {strides = array<i32>} : memref<2x36xf32, #tpu.memory_space<vmem>>, vector<1x9xf32>,
    %121 = vector.extract_strided_slice %110 {offsets = [2, 9], sizes = [1, 9], strides = [1, 1]} : vector<4x128xf32> to vector<1x9xf32>
    %c1_88 = arith.constant 1 : index
    %c18_89 = arith.constant 18 : index
    %122 = vector.load %arg18[%c1_88, %c18_89] : memref<2x36xf32, #tpu.memory_space<vmem>>, vector<1x9xf32>
    tpu.vector_store %arg18[%c1_88, %c18_89], %121 {strides = array<i32>} : memref<2x36xf32, #tpu.memory_space<vmem>>, vector<1x9xf32>,
    %123 = vector.extract_strided_slice %110 {offsets = [3, 0], sizes = [1, 9], strides = [1, 1]} : vector<4x128xf32> to vector<1x9xf32>
    %c0_90 = arith.constant 0 : index
    %c27 = arith.constant 27 : index
    %124 = vector.load %arg18[%c0_90, %c27] : memref<2x36xf32, #tpu.memory_space<vmem>>, vector<1x9xf32>
    tpu.vector_store %arg18[%c0_90, %c27], %123 {strides = array<i32>} : memref<2x36xf32, #tpu.memory_space<vmem>>, vector<1x9xf32>,
    %125 = vector.extract_strided_slice %110 {offsets = [3, 9], sizes = [1, 9], strides = [1, 1]} : vector<4x128xf32> to vector<1x9xf32>
    %c1_91 = arith.constant 1 : index
    %c27_92 = arith.constant 27 : index
    %126 = vector.load %arg18[%c1_91, %c27_92] : memref<2x36xf32, #tpu.memory_space<vmem>>, vector<1x9xf32>
    tpu.vector_store %arg18[%c1_91, %c27_92], %125 {strides = array<i32>} : memref<2x36xf32, #tpu.memory_space<vmem>>, vector<1x9xf32>,
    %c0_93 = arith.constant 0 : index
    %c0_94 = arith.constant 0 : index
    %127 = vector.load %arg18[%c0_93, %c0_94] : memref<2x36xf32, #tpu.memory_space<vmem>>, vector<2x36xf32>
    %c0_95 = arith.constant 0 : index
    %c0_96 = arith.constant 0 : index
    %128 = vector.load %arg7[%c0_95, %c0_96] : memref<36x32xf32, #tpu.memory_space<vmem>>, vector<36x32xf32>
    %cst_97 = arith.constant dense<0.000000e+00> : vector<2x32xf32>
    %129 = tpu.matmul %127, %128, %cst_97 {dimension_numbers = #tpu.dot_dimension_numbers<[1], [0], [0], [1], [0, 0, 1, 1], [], []>} : vector<2x36xf32>, vector<36x32xf32>, vector<2x32xf32> -> vector<2x32xf32>
    %c0_98 = arith.constant 0 : index
    %c0_99 = arith.constant 0 : index
    %130 = vector.load %arg8[%c0_98, %c0_99] : memref<1x32xf32, #tpu.memory_space<vmem>>, vector<1x32xf32>
    %131 = vector.broadcast %130 : vector<1x32xf32> to vector<2x32xf32>
    %132 = arith.addf %129, %131 : vector<2x32xf32>
    %cst_100 = arith.constant 0.000000e+00 : f32
    %133 = vector.broadcast %cst_100 : f32 to vector<2x32xf32>
    %134 = arith.maximumf %132, %133 : vector<2x32xf32>
    %c0_101 = arith.constant 0 : index
    %c0_102 = arith.constant 0 : index
    %135 = vector.load %arg9[%c0_101, %c0_102] : memref<32x32xf32, #tpu.memory_space<vmem>>, vector<32x32xf32>
    %cst_103 = arith.constant dense<0.000000e+00> : vector<2x32xf32>
    %136 = tpu.matmul %134, %135, %cst_103 {dimension_numbers = #tpu.dot_dimension_numbers<[1], [0], [0], [1], [0, 0, 1, 1], [], []>} : vector<2x32xf32>, vector<32x32xf32>, vector<2x32xf32> -> vector<2x32xf32>
    %c0_104 = arith.constant 0 : index
    %c0_105 = arith.constant 0 : index
    %137 = vector.load %arg10[%c0_104, %c0_105] : memref<1x32xf32, #tpu.memory_space<vmem>>, vector<1x32xf32>
    %138 = vector.broadcast %137 : vector<1x32xf32> to vector<2x32xf32>
    %139 = arith.addf %136, %138 : vector<2x32xf32>
    %cst_106 = arith.constant 0.000000e+00 : f32
    %140 = vector.broadcast %cst_106 : f32 to vector<2x32xf32>
    %141 = arith.maximumf %139, %140 : vector<2x32xf32>
    %c0_107 = arith.constant 0 : index
    %c0_108 = arith.constant 0 : index
    %142 = vector.load %arg11[%c0_107, %c0_108] : memref<32x32xf32, #tpu.memory_space<vmem>>, vector<32x32xf32>
    %cst_109 = arith.constant dense<0.000000e+00> : vector<2x32xf32>
    %143 = tpu.matmul %141, %142, %cst_109 {dimension_numbers = #tpu.dot_dimension_numbers<[1], [0], [0], [1], [0, 0, 1, 1], [], []>} : vector<2x32xf32>, vector<32x32xf32>, vector<2x32xf32> -> vector<2x32xf32>
    %c0_110 = arith.constant 0 : index
    %c0_111 = arith.constant 0 : index
    %144 = vector.load %arg12[%c0_110, %c0_111] : memref<1x32xf32, #tpu.memory_space<vmem>>, vector<1x32xf32>
    %145 = vector.broadcast %144 : vector<1x32xf32> to vector<2x32xf32>
    %146 = arith.addf %143, %145 : vector<2x32xf32>
    %cst_112 = arith.constant 0.000000e+00 : f32
    %147 = vector.broadcast %cst_112 : f32 to vector<2x32xf32>
    %148 = arith.maximumf %146, %147 : vector<2x32xf32>
    %c0_113 = arith.constant 0 : index
    %c0_114 = arith.constant 0 : index
    %149 = vector.load %arg13[%c0_113, %c0_114] : memref<32x1xf32, #tpu.memory_space<vmem>>, vector<32x1xf32>
    %cst_115 = arith.constant dense<0.000000e+00> : vector<2x1xf32>
    %150 = tpu.matmul %148, %149, %cst_115 {dimension_numbers = #tpu.dot_dimension_numbers<[1], [0], [0], [1], [0, 0, 1, 1], [], []>} : vector<2x32xf32>, vector<32x1xf32>, vector<2x1xf32> -> vector<2x1xf32>
    %c0_116 = arith.constant 0 : index
    %c0_117 = arith.constant 0 : index
    %151 = vector.load %arg14[%c0_116, %c0_117] : memref<2x1xf32, #tpu.memory_space<vmem>>, vector<2x1xf32>
    tpu.vector_store %arg14[%c0_116, %c0_117], %150 {strides = array<i32>} : memref<2x1xf32, #tpu.memory_space<vmem>>, vector<2x1xf32>,
    return
  }
}

</mosaic_0001>

<bundles_post_ra>
// kernel: tpu_custom_call.1
= control target key start
LH: loop header
LB: loop body
LE: loop exit
PB: predicated region body
PF: predicated region fallthrough
CT: control target
= control target key end

     0   :  { %19 = vsyncpa [#allocation7], 0  ;;  %s3134_s0 = inlined_call_operand.hbm [shape: f32[8,896], index: 0, kind: input, shape index: {}]   ;;  %s3135_s1 = inlined_call_operand.hbm [shape: f32[8,72], index: 1, kind: input, shape index: {}]   ;;  %s3136_s2 = inlined_call_operand.vmem [shape: f32[8,1], index: 2, kind: input, shape index: {}]   ;;  %s3137_s3 = inlined_call_operand.hbm [shape: f32[4,72], index: 3, kind: input, shape index: {}]   ;;  %s3138_s4 = inlined_call_operand.vmem [shape: f32[4,1], index: 4, kind: input, shape index: {}]   ;;  %s3139_s5 = inlined_call_operand.hbm [shape: f32[768,128], index: 5, kind: input, shape index: {}]   ;;  %s3140_s6 = inlined_call_operand.vmem [shape: f32[128,128], index: 6, kind: input, shape index: {}]   ;;  %s3141_s7 = inlined_call_operand.vmem [shape: f32[36,32], index: 7, kind: input, shape index: {}]   ;;  %s3142_s8 = inlined_call_operand.hbm [shape: f32[1,32], index: 8, kind: input, shape index: {}]   ;;  %s3143_s9 = inlined_call_operand.hbm [shape: f32[32,32], index: 9, kind: input, shape index: {}]   ;;  %s3144_s10 = inlined_call_operand.hbm [shape: f32[1,32], index: 10, kind: input, shape index: {}]   ;;  %s3145_s11 = inlined_call_operand.vmem [shape: f32[32,32], index: 11, kind: input, shape index: {}]   ;;  %s3146_s12 = inlined_call_operand.vmem [shape: f32[1,32], index: 12, kind: input, shape index: {}]   ;;  %s3147_s13 = inlined_call_operand.vmem [shape: f32[32,1], index: 13, kind: input, shape index: {}]   ;;  %s3148_s14 = inlined_call_operand.vmem [shape: f32[2,1], index: 14, kind: output, shape index: {}]  }
   0x1   :  { %20 = vsyncpa [#allocation9], 0 }
   0x2   :  { %21 = vsyncpa [#allocation12], 0 }
   0x3   :  { %22 = vsyncpa [#allocation15], 0  ;;  %s2504_s29 = smov [#allocation8]   ;;  %s2505_s15 = smov [#allocation11]  }
   0x4   :  { %s39_s30 = sshll.u32 %s2504_s29, 4  ;;  %s62_s16 = sshll.u32 %s2505_s15, 4  ;;  %s40_s30 = int_to_ptr.vmem [resolvable:$true] %s39_s30  ;;  %s2608_s16 = int_to_ptr.vmem [resolvable:$true] %s62_s16 }
   0x5   :  { %s2342_s19 = scalar_lea.hbm %s3135_s1, 128 }
   0x6   :  { %p2343_p0 = scmp.ne.s32.totalorder %s3135_s1, %s2342_s19  ;;  %p2346_p1 = scmp.lt.u32.totalorder %s2342_s19, %s3135_s1 }
   0x8   :  { %p2348_p2 = pnand %p2346_p1, %p2343_p0 }
   0xa   :  { %2351 = shalt.err (!%p2348_p2)
}
   0xb   :  { %s2352_s24 = scalar_lea.vmem %s40_s30, 128  ;;  %p2357_p4 = scmp.lt.s32.totalorder %s40_s30, %s40_s30 }
   0xc   :  { %p2353_p3 = scmp.ne.s32.totalorder %s40_s30, %s2352_s24  ;;  %p2358_p5 = scmp.lt.s32.totalorder %s2352_s24, %s2352_s24 }
   0xe   :  { %p2359_p6 = por %p2358_p5, %p2357_p4 }
  0x10   :  { %p2360_p7 = pnand %p2359_p6, %p2353_p3 }
  0x12   :  { %2363 = shalt.err (!%p2360_p7)
}
  0x13   :  { %42 = dma.hbm_to_vmem [thread:$0]  %s3135_s1, 128, %s40_s30, [#allocation9]  }
  0x14   :  { %s2364_s29 = scalar_lea.hbm %s3139_s5, 12288 }
  0x15   :  { %p2365_p8 = scmp.ne.s32.totalorder %s3139_s5, %s2364_s29  ;;  %p2368_p9 = scmp.lt.u32.totalorder %s2364_s29, %s3139_s5 }
  0x17   :  { %p2370_p10 = pnand %p2368_p9, %p2365_p8 }
  0x19   :  { %2373 = shalt.err (!%p2370_p10)
}
  0x1a   :  { %s2374_s20 = scalar_lea.vmem %s2608_s16, 12288  ;;  %p2379_p12 = scmp.lt.s32.totalorder %s2608_s16, %s2608_s16 }
  0x1b   :  { %p2375_p11 = scmp.ne.s32.totalorder %s2608_s16, %s2374_s20  ;;  %p2380_p13 = scmp.lt.s32.totalorder %s2374_s20, %s2374_s20 }
  0x1d   :  { %p2381_p0 = por %p2380_p13, %p2379_p12 }
  0x1f   :  { %p2382_p1 = pnand %p2381_p0, %p2375_p11 }
  0x21   :  { %2385 = shalt.err (!%p2382_p1)
}
  0x22   :  { %s2506_s1 = smov 128   ;;  %s2507_s30 = smov 8  }
  0x23   :  { %68 = dma.hbm_to_vmem [thread:$0]  %s3139_s5, 12288, %s2608_s16, [#allocation12], %s2506_s1, %s2506_s1, %s2507_s30  }
  0x24   :  { %s2508_s23 = smov [#allocation14]   ;;  %s2509_s25 = smov [#allocation6]  }
  0x25   :  { %s88_s24 = sshll.u32 %s2508_s23, 4  ;;  %s29_s26 = sshll.u32 %s2509_s25, 4  ;;  %s89_s24 = int_to_ptr.vmem [resolvable:$true] %s88_s24  ;;  %s30_s26 = int_to_ptr.vmem [resolvable:$true] %s29_s26 }
  0x26   :  { %s2386_s29 = scalar_lea.hbm %s3143_s9, 512 }
  0x27   :  { %p2387_p2 = scmp.ne.s32.totalorder %s3143_s9, %s2386_s29  ;;  %p2390_p3 = scmp.lt.u32.totalorder %s2386_s29, %s3143_s9 }
  0x29   :  { %p2392_p4 = pnand %p2390_p3, %p2387_p2 }
  0x2b   :  { %2395 = shalt.err (!%p2392_p4)
}
  0x2c   :  { %s2396_s5 = scalar_lea.vmem %s89_s24, 512  ;;  %p2401_p6 = scmp.lt.s32.totalorder %s89_s24, %s89_s24 }
  0x2d   :  { %p2397_p5 = scmp.ne.s32.totalorder %s89_s24, %s2396_s5  ;;  %p2402_p7 = scmp.lt.s32.totalorder %s2396_s5, %s2396_s5 }
  0x2f   :  { %p2403_p8 = por %p2402_p7, %p2401_p6 }
  0x31   :  { %p2404_p9 = pnand %p2403_p8, %p2397_p5 }
  0x33   :  { %2407 = shalt.err (!%p2404_p9)
}
  0x34   :  { %94 = dma.hbm_to_vmem [thread:$0]  %s3143_s9, 512, %s89_s24, [#allocation15], %s2506_s1, %s2506_s1, %s2507_s30  }
  0x35   :  { %s2408_s23 = scalar_lea.hbm %s3134_s0, 896 }
  0x36   :  { %p2409_p10 = scmp.ne.s32.totalorder %s3134_s0, %s2408_s23  ;;  %p2412_p11 = scmp.lt.u32.totalorder %s2408_s23, %s3134_s0 }
  0x38   :  { %p2414_p12 = pnand %p2412_p11, %p2409_p10 }
  0x3a   :  { %2417 = shalt.err (!%p2414_p12)
}
  0x3b   :  { %s2418_s15 = scalar_lea.vmem %s30_s26, 896  ;;  %p2423_p0 = scmp.lt.s32.totalorder %s30_s26, %s30_s26 }
  0x3c   :  { %p2419_p13 = scmp.ne.s32.totalorder %s30_s26, %s2418_s15  ;;  %p2424_p1 = scmp.lt.s32.totalorder %s2418_s15, %s2418_s15 }
  0x3e   :  { %p2425_p2 = por %p2424_p1, %p2423_p0 }
  0x40   :  { %p2426_p3 = pnand %p2425_p2, %p2419_p13 }
  0x42   :  { %2429 = shalt.err (!%p2426_p3)
}
  0x43   :  { %32 = dma.hbm_to_vmem [thread:$0]  %s3134_s0, 896, %s30_s26, [#allocation7]  }
  0x44   :  { %s2510_s30 = smov [#allocation10]   ;;  %s2511_s17 = smov [#allocation13]  }
  0x45   :  { %s51_s24 = sshll.u32 %s2510_s30, 4  ;;  %s79_s18 = sshll.u32 %s2511_s17, 4  ;;  %s52_s24 = int_to_ptr.vmem [resolvable:$true] %s51_s24  ;;  %s80_s18 = int_to_ptr.vmem [resolvable:$true] %s79_s18 }
  0x46   :  { %s2430_s16 = scalar_lea.hbm %s3137_s3, 64 }
  0x47   :  { %p2431_p4 = scmp.ne.s32.totalorder %s3137_s3, %s2430_s16  ;;  %p2434_p5 = scmp.lt.u32.totalorder %s2430_s16, %s3137_s3 }
  0x49   :  { %p2436_p6 = pnand %p2434_p5, %p2431_p4 }
  0x4b   :  { %2439 = shalt.err (!%p2436_p6)
}
  0x4c   :  { %s2440_s0 = scalar_lea.vmem %s52_s24, 64  ;;  %p2445_p8 = scmp.lt.s32.totalorder %s52_s24, %s52_s24 }
  0x4d   :  { %p2441_p7 = scmp.ne.s32.totalorder %s52_s24, %s2440_s0  ;;  %p2446_p9 = scmp.lt.s32.totalorder %s2440_s0, %s2440_s0 }
  0x4f   :  { %p2447_p10 = por %p2446_p9, %p2445_p8 }
  0x51   :  { %p2448_p11 = pnand %p2447_p10, %p2441_p7 }
  0x53   :  { %2451 = shalt.err (!%p2448_p11)
}
  0x54   :  { %54 = dma.hbm_to_vmem [thread:$0]  %s3137_s3, 64, %s52_s24, [#allocation9]  }
  0x55   :  { %s2452_s29 = scalar_lea.hbm %s3142_s8, 16 }
  0x56   :  { %p2453_p12 = scmp.ne.s32.totalorder %s3142_s8, %s2452_s29  ;;  %p2456_p13 = scmp.lt.u32.totalorder %s2452_s29, %s3142_s8 }
  0x58   :  { %p2458_p0 = pnand %p2456_p13, %p2453_p12 }
  0x5a   :  { %2461 = shalt.err (!%p2458_p0)
}
  0x5b   :  { %s2462_s17 = scalar_lea.vmem %s80_s18, 16  ;;  %s2466_s19 = scalar_lea.vmem %s80_s18, 32 }
  0x5c   :  { %p2463_p1 = scmp.ne.s32.totalorder %s80_s18, %s2462_s17  ;;  %p2467_p2 = scmp.lt.s32.totalorder %s80_s18, %s80_s18 }
  0x5d   :  { %p2468_p3 = scmp.lt.s32.totalorder %s2466_s19, %s2462_s17 }
  0x5f   :  { %p2469_p4 = por %p2468_p3, %p2467_p2 }
  0x61   :  { %p2470_p5 = pnand %p2469_p4, %p2463_p1 }
  0x63   :  { %2473 = shalt.err (!%p2470_p5)
}
  0x64   :  { %82 = dma.hbm_to_vmem [thread:$0]  %s3142_s8, 16, %s80_s18, [#allocation12]  }
  0x65   :  { %s2512_s5 = smov [#allocation16]   ;;  %s2474_s22 = scalar_lea.hbm %s3144_s10, 16 }
  0x66   :  { %s101_s16 = sshll.u32 %s2512_s5, 4  ;;  %p2475_p6 = scmp.ne.s32.totalorder %s3144_s10, %s2474_s22  ;;  %s102_s16 = int_to_ptr.vmem [resolvable:$true] %s101_s16 }
  0x67   :  { %p2478_p7 = scmp.lt.u32.totalorder %s2474_s22, %s3144_s10 }
  0x69   :  { %p2480_p8 = pnand %p2478_p7, %p2475_p6 }
  0x6b   :  { %2483 = shalt.err (!%p2480_p8)
}
  0x6c   :  { %s2484_s27 = scalar_lea.vmem %s102_s16, 16  ;;  %s2488_s8 = scalar_lea.vmem %s102_s16, 32 }
  0x6d   :  { %p2485_p9 = scmp.ne.s32.totalorder %s102_s16, %s2484_s27  ;;  %p2489_p10 = scmp.lt.s32.totalorder %s102_s16, %s102_s16 }
  0x6e   :  { %p2490_p11 = scmp.lt.s32.totalorder %s2488_s8, %s2484_s27 }
  0x70   :  { %p2491_p12 = por %p2490_p11, %p2489_p10 }
  0x72   :  { %p2492_p13 = pnand %p2491_p12, %p2485_p9 }
  0x74   :  { %2495 = shalt.err (!%p2492_p13)
}
  0x75   :  { %104 = dma.hbm_to_vmem [thread:$0]  %s3144_s10, 16, %s102_s16, [#allocation15]  }
  0x76   :  { %2496 = dma.done.wait [#allocation7], 896  }
  0x77   :  { %2497 = vsyncadd [#allocation7], 4294966400 }
  0x78   :  { %2498 = dma.done.wait [#allocation9], 192  }
  0x79   :  { %2499 = vsyncadd [#allocation9], 4294967104 }
  0x7a   :  { %2500 = dma.done.wait [#allocation12], 12304  }
  0x7b   :  { %2501 = vsyncadd [#allocation12], 4294954992 }
  0x7c   :  { %2502 = dma.done.wait [#allocation15], 528  }
  0x7d   :  { %2503 = vsyncadd [#allocation15], 4294966768  ;;  %v2699_v0 = vld [vmem:[#allocation6] sm:$0xff]  ;;  %v2701_v1 = vld [vmem:[#allocation6 + $0x8] sm:$0xff]  ;;  %s2513_s29 = smov 127   ;;  %s2514_s10 = smov 126  }
  0x7e   :  { %v2703_v2 = vld [vmem:[#allocation6 + $0x10] sm:$0xff]  ;;  %152 = vrot.lane.b32.xlu1 %v2699_v0, %s2513_s29  ;;  %v2709_v4 = vld [vmem:[#allocation6 + $0x18] sm:$0xff]  ;;  %v2711_v5 = vld [vmem:[#allocation6 + $0x20] sm:$0xff]  ;;  %s2515_s15 = smov 110   ;;  %s2516_s9 = smov 109   ;;  %v2520_v7 = vmov 0.0  }
  0x7f   :  { %v2166_v3 = vpack.i.bf16 %v2703_v2, %v2701_v1  ;;  %v2171_v6 = vpack.i.bf16 %v2711_v5, %v2709_v4  ;;  %s2517_s1 = smov 108   ;;  %s2518_s30 = smov 92   ;;  %443 = vmatprep.mubr.f32.mxu0 %v2520_v7  ;;  %1169 = vst [vmem:[#allocation4 + $0x4] sm:$0xf] %v2520_v7  ;;  %514 = vmatprep.mubr.f32.mxu1 %v2520_v7  ;;  %v2740_v8 = vld [vmem:[#allocation6 + $0x28] sm:$0xff]  ;;  %v144_v9 = vld [vmem:[#allocation6 + $0x30] sm:$0xff] }
  0x80   :  { %s2519_s17 = smov 91   ;;  %s2521_s19 = smov 90   ;;  %v2241_v10 = vpack.i.bf16 %v144_v9, %v2740_v8  ;;  %v2522_v11 = vmov 0   ;;  %v369_v12 = vld [vmem:[%s3136_s2] sm:$0xff]  ;;  %vm166_vm0 = vcmask 1039360   ;;  %vm193_vm1 = vcmask 1031168  }
  0x81   :  { %2167 = vrot.lane.b32.xlu0 %v2166_v3, %s2513_s29  ;;  %2271 = vset.pattern.permute.xlu1 %v2522_v11  ;;  %vm220_vm2 = vcmask 900096   ;;  %vm247_vm3 = vcmask 891904   ;;  %vm274_vm4 = vcmask 883712   ;;  %vm301_vm5 = vcmask 752640   ;;  %s2524_s2 = smov 119   ;;  %s2525_s5 = smov 120  }
  0x82   :  { %2177 = vrot.lane.b32.xlu1 %v2166_v3, %s2514_s10  ;;  %2337 = vset.pattern.permute.xlu0 %v2522_v11  ;;  %vm328_vm6 = vcmask 744448   ;;  %vm355_vm7 = vcmask 736256   ;;  %vm375_vm8 = vcmask 588800   ;;  %s2526_s16 = smov 112   ;;  %s2527_s20 = smov 118   ;;  %vm2528_vm9 = vmmov 0  }
  0x83   :  { %s2529_s21 = smov 111   ;;  %vm1050_vm10 = vcmask 982016   ;;  %vm1057_vm11 = vcmask 973824   ;;  %vm1064_vm12 = vcmask 965632   ;;  %vm1071_vm13 = vcmask 916480  }
  0x84   :  { %vm1078_vm14 = vcmask 908288   ;;  %vm1276_vm15 = vcmask 1043456  }
  0x85   :  { %2172 = vrot.lane.b32.xlu0 %v2171_v6, %s2513_s29 }
  0x86   :  { %2187 = vrot.lane.b32.xlu1 %v2166_v3, %s2515_s15 }
  0x89   :  { %2182 = vrot.lane.b32.xlu0 %v2171_v6, %s2514_s10 }
  0x8a   :  { %179 = vrot.lane.b32.xlu1 %v2699_v0, %s2514_s10 }
  0x8d   :  { %2192 = vrot.lane.b32.xlu0 %v2171_v6, %s2515_s15 }
  0x8e   :  { %2197 = vrot.lane.b32.xlu1 %v2166_v3, %s2516_s9 }
  0x91   :  { %206 = vrot.lane.b32.xlu0 %v2699_v0, %s2515_s15 }
  0x92   :  { %2207 = vrot.lane.b32.xlu1 %v2166_v3, %s2517_s1 }
  0x95   :  { %2202 = vrot.lane.b32.xlu0 %v2171_v6, %s2516_s9 }
  0x96   :  { %233 = vrot.lane.b32.xlu1 %v2699_v0, %s2516_s9 }
  0x99   :  { %2212 = vrot.lane.b32.xlu0 %v2171_v6, %s2517_s1 }
  0x9a   :  { %2217 = vrot.lane.b32.xlu1 %v2166_v3, %s2518_s30 }
  0x9d   :  { %260 = vrot.lane.b32.xlu0 %v2699_v0, %s2517_s1 }
  0x9e   :  { %2227 = vrot.lane.b32.xlu1 %v2166_v3, %s2519_s17 }
  0xa1   :  { %2222 = vrot.lane.b32.xlu0 %v2171_v6, %s2518_s30 }
  0xa2   :  { %287 = vrot.lane.b32.xlu1 %v2699_v0, %s2518_s30 }
  0xa5   :  { %2232 = vrot.lane.b32.xlu0 %v2171_v6, %s2519_s17 }
  0xa6   :  { %343 = vrot.lane.b32.xlu1 %v2701_v1, %s2521_s19 }
  0xa9   :  { %314 = vrot.lane.b32.xlu0 %v2699_v0, %s2519_s17 }
  0xaa   :  { %347 = vrot.lane.b32.xlu1 %v2709_v4, %s2521_s19 }
  0xad   :  { %345 = vrot.lane.b32.xlu0 %v2703_v2, %s2521_s19 }
  0xae   :  { %341 = vrot.lane.b32.xlu1 %v2699_v0, %s2521_s19 }
  0xb1   :  { %349 = vrot.lane.b32.xlu0 %v2711_v5, %s2521_s19 }
  0xb2   :  { %2242 = vrot.lane.b32.xlu1 %v2241_v10, %s2514_s10 }
  0xb5   :  { %2237 = vrot.lane.b32.xlu0 %v2241_v10, %s2513_s29 }
  0xb6   :  { %2252 = vrot.lane.b32.xlu1 %v2241_v10, %s2516_s9 }
  0xb9   :  { %2247 = vrot.lane.b32.xlu0 %v2241_v10, %s2515_s15 }
  0xba   :  { %2262 = vrot.lane.b32.xlu1 %v2241_v10, %s2518_s30 }
  0xbd   :  { %2257 = vrot.lane.b32.xlu0 %v2241_v10, %s2517_s1 }
  0xbe   :  { %351 = vrot.lane.b32.xlu1 %v2740_v8, %s2521_s19 }
  0xc1   :  { %2267 = vrot.lane.b32.xlu0 %v2241_v10, %s2519_s17 }
  0xc2   :  { %372 = vperm.xlu1 %2271, %v369_v12  }
  0xc5   :  { %353 = vrot.lane.b32.xlu0 %v144_v9, %s2521_s19 }
  0xf0   :  { %v153_v13 = vpop.permute.xlu1 %152 }
  0xf3   :  { %v2168_v14 = vpop.permute.xlu0 %2167 }
  0xf4   :  { %v2170_v15 = vunpack.i.h.bf16 %v2168_v14  ;;  %v2169_v16 = vunpack.i.l.bf16 %v2168_v14  ;;  %v2178_v17 = vpop.permute.xlu1 %2177 }
  0xf5   :  { %v2180_v18 = vunpack.i.h.bf16 %v2178_v17  ;;  %v2179_v19 = vunpack.i.l.bf16 %v2178_v17 }
  0xf6   :  { %v168_v20 = vsel %vm166_vm0, %v2169_v16, %v2170_v15  ;;  %v167_v21 = vsel %vm166_vm0, %v153_v13, %v2169_v16 }
  0xf7   :  { %v2757_v22 = vpop.permute.xlu0 %2172  ;;  %v1933_v23 = vpack.c.bf16 %v168_v20, %v2701_v1  ;;  %v1935_v24 = vpack.c.bf16 %v167_v21, %v2699_v0  ;;  %v195_v28 = vsel %vm193_vm1, %v2179_v19, %v2180_v18 }
  0xf8   :  { %v2175_v25 = vunpack.i.h.bf16 %v2757_v22  ;;  %v2174_v26 = vunpack.i.l.bf16 %v2757_v22  ;;  %v2188_v27 = vpop.permute.xlu1 %2187 }
  0xf9   :  { %1934 = vmatprep.subr.bf16.mxu0 %v1933_v23  ;;  %v2190_v29 = vunpack.i.h.bf16 %v2188_v27  ;;  %v2189_v30 = vunpack.i.l.bf16 %v2188_v27 }
  0xfa   :  { %1936 = vmatpush1.bf16.msra.mxu0 %v1935_v24  ;;  %v170_v31 = vsel %vm166_vm0, %v2174_v26, %v2175_v25  ;;  %v169_v32 = vsel %vm166_vm0, %v2170_v15, %v2174_v26 }
  0xfb   :  { %v2768_v33 = vpop.permute.xlu0 %2182  ;;  %v1949_v34 = vpack.c.bf16 %v170_v31, %v2709_v4  ;;  %v1951_v35 = vpack.c.bf16 %v169_v32, %v2703_v2  ;;  %v222_v36 = vsel %vm220_vm2, %v2189_v30, %v2190_v29 }
  0xfc   :  { %v2185_v37 = vunpack.i.h.bf16 %v2768_v33  ;;  %v2184_v38 = vunpack.i.l.bf16 %v2768_v33  ;;  %v180_v39 = vpop.permute.xlu1 %179  ;;  %v1937_v40 = vpack.c.bf16 %v222_v36, %v195_v28 }
  0xfd   :  { %1950 = vmatprep.subr.bf16.mxu1 %v1949_v34  ;;  %v194_v54 = vsel %vm193_vm1, %v180_v39, %v2179_v19 }
  0xfe   :  { %1952 = vmatpush1.bf16.msra.mxu1 %v1951_v35  ;;  %1938 = vmatprep.subr.bf16.mxu0 %v1937_v40  ;;  %v197_v45 = vsel %vm193_vm1, %v2184_v38, %v2185_v37  ;;  %v196_v46 = vsel %vm193_vm1, %v2180_v18, %v2184_v38 }
  0xff   :  { %v2775_v41 = vpop.permute.xlu0 %2192 }
 0x100   :  { %v2195_v42 = vunpack.i.h.bf16 %v2775_v41  ;;  %v2194_v43 = vunpack.i.l.bf16 %v2775_v41  ;;  %v2198_v44 = vpop.permute.xlu1 %2197 }
 0x101   :  { %v2200_v47 = vunpack.i.h.bf16 %v2198_v44  ;;  %v2199_v48 = vunpack.i.l.bf16 %v2198_v44 }
 0x102   :  { %v224_v49 = vsel %vm220_vm2, %v2194_v43, %v2195_v42  ;;  %v223_v50 = vsel %vm220_vm2, %v2190_v29, %v2194_v43 }
 0x103   :  { %v207_v51 = vpop.permute.xlu0 %206  ;;  %v1953_v52 = vpack.c.bf16 %v224_v49, %v197_v45  ;;  %v1955_v53 = vpack.c.bf16 %v223_v50, %v196_v46  ;;  %v249_v60 = vsel %vm247_vm3, %v2199_v48, %v2200_v47 }
 0x104   :  { %v221_v55 = vsel %vm220_vm2, %v207_v51, %v2189_v30  ;;  %v2208_v57 = vpop.permute.xlu1 %2207 }
 0x105   :  { %v1939_v56 = vpack.c.bf16 %v221_v55, %v194_v54  ;;  %1954 = vmatprep.subr.bf16.mxu1 %v1953_v52  ;;  %v2210_v58 = vunpack.i.h.bf16 %v2208_v57  ;;  %v2209_v59 = vunpack.i.l.bf16 %v2208_v57 }
 0x106   :  { %1956 = vmatpush1.bf16.msra.mxu1 %v1955_v53 }
 0x107   :  { %v2790_v61 = vpop.permute.xlu0 %2202  ;;  %1940 = vmatpush1.bf16.msra.mxu0 %v1939_v56  ;;  %v276_v62 = vsel %vm274_vm4, %v2209_v59, %v2210_v58  ;;  %v2830_v56 = vld [vmem:[#allocation8] sm:$0xff] }
 0x108   :  { %v2205_v63 = vunpack.i.h.bf16 %v2790_v61  ;;  %v2204_v0 = vunpack.i.l.bf16 %v2790_v61  ;;  %v234_v1 = vpop.permute.xlu1 %233  ;;  %v1941_v2 = vpack.c.bf16 %v276_v62, %v249_v60 }
 0x109   :  { %v248_v19 = vsel %vm247_vm3, %v234_v1, %v2199_v48 }
 0x10a   :  { %1942 = vmatprep.subr.bf16.mxu0 %v1941_v2  ;;  %v251_v10 = vsel %vm247_vm3, %v2204_v0, %v2205_v63  ;;  %v250_v11 = vsel %vm247_vm3, %v2200_v47, %v2204_v0 }
 0x10b   :  { %v2795_v3 = vpop.permute.xlu0 %2212 }
 0x10c   :  { %v2215_v4 = vunpack.i.h.bf16 %v2795_v3  ;;  %v2214_v6 = vunpack.i.l.bf16 %v2795_v3  ;;  %v2218_v9 = vpop.permute.xlu1 %2217 }
 0x10d   :  { %v2220_v12 = vunpack.i.h.bf16 %v2218_v9  ;;  %v2219_v13 = vunpack.i.l.bf16 %v2218_v9 }
 0x10e   :  { %v278_v14 = vsel %vm274_vm4, %v2214_v6, %v2215_v4  ;;  %v277_v15 = vsel %vm274_vm4, %v2210_v58, %v2214_v6 }
 0x10f   :  { %v261_v16 = vpop.permute.xlu0 %260  ;;  %v1957_v17 = vpack.c.bf16 %v278_v14, %v251_v10  ;;  %v1959_v18 = vpack.c.bf16 %v277_v15, %v250_v11  ;;  %v303_v27 = vsel %vm301_vm5, %v2219_v13, %v2220_v12 }
 0x110   :  { %v275_v20 = vsel %vm274_vm4, %v261_v16, %v2209_v59  ;;  %v2228_v23 = vpop.permute.xlu1 %2227 }
 0x111   :  { %v1943_v21 = vpack.c.bf16 %v275_v20, %v248_v19  ;;  %1958 = vmatprep.subr.bf16.mxu1 %v1957_v17  ;;  %v2230_v24 = vunpack.i.h.bf16 %v2228_v23  ;;  %v2229_v26 = vunpack.i.l.bf16 %v2228_v23 }
 0x112   :  { %1960 = vmatpush1.bf16.msra.mxu1 %v1959_v18 }
 0x113   :  { %v2810_v28 = vpop.permute.xlu0 %2222  ;;  %1944 = vmatpush1.bf16.msra.mxu0 %v1943_v21  ;;  %v330_v29 = vsel %vm328_vm6, %v2229_v26, %v2230_v24 }
 0x114   :  { %v288_v30 = vpop.permute.xlu1 %287  ;;  %v1945_v31 = vpack.c.bf16 %v330_v29, %v303_v27  ;;  %v2225_v32 = vunpack.i.h.bf16 %v2810_v28  ;;  %v2224_v34 = vunpack.i.l.bf16 %v2810_v28 }
 0x115   :  { %v302_v49 = vsel %vm301_vm5, %v288_v30, %v2219_v13 }
 0x116   :  { %1946 = vmatprep.subr.bf16.mxu0 %v1945_v31  ;;  %v305_v40 = vsel %vm301_vm5, %v2224_v34, %v2225_v32  ;;  %v304_v44 = vsel %vm301_vm5, %v2220_v12, %v2224_v34 }
 0x117   :  { %v2815_v35 = vpop.permute.xlu0 %2232 }
 0x118   :  { %v2235_v36 = vunpack.i.h.bf16 %v2815_v35  ;;  %v2234_v38 = vunpack.i.l.bf16 %v2815_v35  ;;  %v344_v39 = vpop.permute.xlu1 %343 }
 0x11a   :  { %v332_v43 = vsel %vm328_vm6, %v2234_v38, %v2235_v36  ;;  %v331_v45 = vsel %vm328_vm6, %v2230_v24, %v2234_v38 }
 0x11b   :  { %v315_v46 = vpop.permute.xlu0 %314  ;;  %v1961_v47 = vpack.c.bf16 %v332_v43, %v305_v40  ;;  %v1963_v48 = vpack.c.bf16 %v331_v45, %v304_v44 }
 0x11c   :  { %v329_v50 = vsel %vm328_vm6, %v315_v46, %v2229_v26  ;;  %v348_v52 = vpop.permute.xlu1 %347 }
 0x11d   :  { %v1947_v51 = vpack.c.bf16 %v329_v50, %v302_v49  ;;  %1962 = vmatprep.subr.bf16.mxu1 %v1961_v47 }
 0x11e   :  { %1964 = vmatpush1.bf16.msra.mxu1 %v1963_v48 }
 0x11f   :  { %v346_v53 = vpop.permute.xlu0 %345  ;;  %1948 = vmatpush1.bf16.msra.mxu0 %v1947_v51 }
 0x120   :  { %v357_v54 = vsel %vm355_vm7, %v344_v39, %v346_v53  ;;  %v342_v55 = vpop.permute.xlu1 %341  ;;  %v358_v62 = vsel %vm355_vm7, %v346_v53, %v348_v52 }
 0x121   :  { %395 = vmatprep.subr.mxu0 %v357_v54  ;;  %v356_v57 = vsel %vm355_vm7, %v342_v55, %v344_v39 }
 0x123   :  { %v2833_v58 = vpop.permute.xlu0 %349  ;;  %396 = vmatpush1.msra.mxu0 %v356_v57 }
 0x124   :  { %v359_v59 = vsel %vm355_vm7, %v348_v52, %v2833_v58  ;;  %1665 = vmatmul.mubr.msk.f32.vlgmr.msra.gmra.mrb[0].mxu0 %vm375_vm8, %v2830_v56  ;;  %v2243_v60 = vpop.permute.xlu1 %2242 }
 0x125   :  { %466 = vmatprep.subr.mxu1 %v359_v59  ;;  %585 = vmatprep.mubr.f32.mxu0 %v2520_v7  ;;  %v2245_v1 = vunpack.i.h.bf16 %v2243_v60  ;;  %v2244_v10 = vunpack.i.l.bf16 %v2243_v60 }
 0x126   :  { %467 = vmatpush1.msra.mxu1 %v358_v62 }
 0x127   :  { %v2238_v0 = vpop.permute.xlu0 %2237  ;;  %1666 = vmatmul.mubr.msk.f32.vlgmr.msra.gmra.mrb[0].mxu1 %vm375_vm8, %v2830_v56  ;;  %v199_v19 = vsel %vm193_vm1, %v2244_v10, %v2245_v1  ;;  %v198_v20 = vsel %vm193_vm1, %v2185_v37, %v2244_v10 }
 0x128   :  { %v2240_v2 = vunpack.i.h.bf16 %v2238_v0  ;;  %v2239_v6 = vunpack.i.l.bf16 %v2238_v0  ;;  %v2253_v9 = vpop.permute.xlu1 %2252 }
 0x129   :  { %v2255_v16 = vunpack.i.h.bf16 %v2253_v9  ;;  %v2254_v22 = vunpack.i.l.bf16 %v2253_v9  ;;  %v704_v9 = vld [vmem:[#allocation11] sm:$0xff] }
 0x12a   :  { %v171_v11 = vsel %vm166_vm0, %v2175_v25, %v2239_v6  ;;  %v172_v12 = vsel %vm166_vm0, %v2239_v6, %v2240_v2  ;;  %v720_v2 = vld [vmem:[#allocation11 + $0x80] sm:$0xff]  ;;  %v721_v6 = vld [vmem:[#allocation11 + $0x88] sm:$0xff] }
 0x12b   :  { %v1967_v13 = vpack.c.bf16 %v171_v11, %v2711_v5  ;;  %v2248_v14 = vpop.permute.xlu0 %2247  ;;  %v1965_v15 = vpack.c.bf16 %v172_v12, %v2740_v8  ;;  %v253_v30 = vsel %vm247_vm3, %v2254_v22, %v2255_v16  ;;  %v252_v33 = vsel %vm247_vm3, %v2205_v63, %v2254_v22  ;;  %v705_v12 = vld [vmem:[#allocation11 + $0x8] sm:$0xff] }
 0x12c   :  { %v2250_v17 = vunpack.i.h.bf16 %v2248_v14  ;;  %v2249_v18 = vunpack.i.l.bf16 %v2248_v14  ;;  %v2263_v8 = vpop.permute.xlu1 %2262  ;;  %v1981_v11 = vpack.c.bf16 %v721_v6, %v720_v2  ;;  %v723_v14 = vld [vmem:[#allocation11 + $0x98] sm:$0xff]  ;;  %v1983_v16 = vpack.c.bf16 %v705_v12, %v704_v9  ;;  %v725_v22 = vld [vmem:[#allocation11 + $0xa8] sm:$0xff]  ;;  %v718_v6 = vld [vmem:[#allocation11 + $0x70] sm:$0xff] }
 0x12d   :  { %1966 = vmatprep.subr.bf16.mxu0 %v1965_v15  ;;  %v2265_v26 = vunpack.i.h.bf16 %v2263_v8  ;;  %v2264_v37 = vunpack.i.l.bf16 %v2263_v8  ;;  %v708_v8 = vld [vmem:[#allocation11 + $0x20] sm:$0xff]  ;;  %v719_v9 = vld [vmem:[#allocation11 + $0x78] sm:$0xff]  ;;  %vm1307_vm3 = vcmask 215186  }
 0x12e   :  { %v225_v25 = vsel %vm220_vm2, %v2195_v42, %v2249_v18  ;;  %1968 = vmatpush1.bf16.msra.mxu0 %v1967_v13  ;;  %v226_v5 = vsel %vm220_vm2, %v2249_v18, %v2250_v17  ;;  %v722_v13 = vld [vmem:[#allocation11 + $0x90] sm:$0xff]  ;;  %1982 = vmatprep.subr.bf16.mxu1 %v1981_v11  ;;  %v2011_v12 = vpack.c.bf16 %v719_v9, %v718_v6 }
 0x12f   :  { %v1971_v21 = vpack.c.bf16 %v225_v25, %v198_v20  ;;  %v2258_v23 = vpop.permute.xlu0 %2257  ;;  %v1969_v24 = vpack.c.bf16 %v226_v5, %v199_v19  ;;  %v307_v43 = vsel %vm301_vm5, %v2264_v37, %v2265_v26  ;;  %v306_v61 = vsel %vm301_vm5, %v2225_v32, %v2264_v37  ;;  %v706_v18 = vld [vmem:[#allocation11 + $0x10] sm:$0xff]  ;;  %v707_v19 = vld [vmem:[#allocation11 + $0x18] sm:$0xff]  ;;  %v724_v20 = vld [vmem:[#allocation11 + $0xa0] sm:$0xff]  ;;  %1984 = vmatpush3.bf16.msra.mxu1 %v1983_v16 }
 0x130   :  { %v2260_v27 = vunpack.i.h.bf16 %v2258_v23  ;;  %v2259_v29 = vunpack.i.l.bf16 %v2258_v23  ;;  %v1985_v17 = vpack.c.bf16 %v723_v14, %v722_v13  ;;  %v1987_v5 = vpack.c.bf16 %v707_v19, %v706_v18  ;;  %v709_v23 = vld [vmem:[#allocation11 + $0x28] sm:$0xff]  ;;  %v727_v26 = vld [vmem:[#allocation11 + $0xb8] sm:$0xff]  ;;  %v728_v37 = vld [vmem:[#allocation11 + $0xc0] sm:$0xff] }
 0x131   :  { %1970 = vmatprep.subr.bf16.mxu0 %v1969_v24  ;;  %v726_v24 = vld [vmem:[#allocation11 + $0xb0] sm:$0xff]  ;;  %v755_v13 = vld [vmem:[#allocation11 + $0x198] sm:$0xff]  ;;  %v784_v19 = vld [vmem:[#allocation11 + $0x280] sm:$0xff]  ;;  %vm1329_vm5 = vcmask 293888  }
 0x132   :  { %v279_v41 = vsel %vm274_vm4, %v2215_v4, %v2259_v29  ;;  %1972 = vmatpush1.bf16.msra.mxu0 %v1971_v21  ;;  %v280_v42 = vsel %vm274_vm4, %v2259_v29, %v2260_v27  ;;  %v352_v4 = vpop.permute.xlu1 %351  ;;  %1986 = vmatprep.subr.bf16.mxu1 %v1985_v17  ;;  %v1989_v21 = vpack.c.bf16 %v725_v22, %v724_v20  ;;  %v754_v11 = vld [vmem:[#allocation11 + $0x190] sm:$0xff]  ;;  %v739_v16 = vld [vmem:[#allocation11 + $0x118] sm:$0xff]  ;;  %v785_v20 = vld [vmem:[#allocation11 + $0x288] sm:$0xff]  ;;  %vm1313_vm4 = vcmask 290011  }
 0x133   :  { %v1975_v31 = vpack.c.bf16 %v279_v41, %v252_v33  ;;  %v2268_v34 = vpop.permute.xlu0 %2267  ;;  %v1973_v38 = vpack.c.bf16 %v280_v42, %v253_v30  ;;  %v360_v28 = vsel %vm355_vm7, %v2833_v58, %v352_v4  ;;  %1988 = vmatpush3.bf16.msra.mxu1 %v1987_v5  ;;  %v1991_v27 = vpack.c.bf16 %v709_v23, %v708_v8  ;;  %v710_v30 = vld [vmem:[#allocation11 + $0x30] sm:$0xff]  ;;  %v711_v33 = vld [vmem:[#allocation11 + $0x38] sm:$0xff]  ;;  %v729_v41 = vld [vmem:[#allocation11 + $0xc8] sm:$0xff] }
 0x134   :  { %v2270_v39 = vunpack.i.h.bf16 %v2268_v34  ;;  %v2269_v40 = vunpack.i.l.bf16 %v2268_v34  ;;  %1990 = vmatprep.subr.bf16.mxu1 %v1989_v21  ;;  %v1993_v29 = vpack.c.bf16 %v727_v26, %v726_v24  ;;  %v1995_v42 = vpack.c.bf16 %v711_v33, %v710_v30  ;;  %v712_v34 = vld [vmem:[#allocation11 + $0x40] sm:$0xff]  ;;  %v738_v14 = vld [vmem:[#allocation11 + $0x110] sm:$0xff]  ;;  %v757_v5 = vld [vmem:[#allocation11 + $0x1a8] sm:$0xff] }
 0x135   :  { %1974 = vmatprep.subr.bf16.mxu0 %v1973_v38  ;;  %v713_v38 = vld [vmem:[#allocation11 + $0x48] sm:$0xff]  ;;  %v2017_v17 = vpack.c.bf16 %v755_v13, %v754_v11  ;;  %v2019_v18 = vpack.c.bf16 %v739_v16, %v738_v14  ;;  %v2045_v22 = vpack.c.bf16 %v785_v20, %v784_v19  ;;  %v750_v9 = vld [vmem:[#allocation11 + $0x170] sm:$0xff]  ;;  %v751_v11 = vld [vmem:[#allocation11 + $0x178] sm:$0xff] }
 0x136   :  { %v333_v63 = vsel %vm328_vm6, %v2235_v36, %v2269_v40  ;;  %1976 = vmatpush1.bf16.msra.mxu0 %v1975_v31  ;;  %v334_v3 = vsel %vm328_vm6, %v2269_v40, %v2270_v39  ;;  %v1997_v31 = vpack.c.bf16 %v729_v41, %v728_v37  ;;  %v730_v39 = vld [vmem:[#allocation11 + $0xd0] sm:$0xff]  ;;  %v731_v40 = vld [vmem:[#allocation11 + $0xd8] sm:$0xff]  ;;  %vm1418_vm6 = vcmask 261120  }
 0x137   :  { %v1979_v44 = vpack.c.bf16 %v333_v63, %v306_v61  ;;  %v1977_v45 = vpack.c.bf16 %v334_v3, %v307_v43  ;;  %v354_v46 = vpop.permute.xlu0 %353  ;;  %1992 = vmatpush3.bf16.msra.mxu1 %v1991_v27  ;;  %v1999_v43 = vpack.c.bf16 %v713_v38, %v712_v34  ;;  %v2001_v61 = vpack.c.bf16 %v731_v40, %v730_v39  ;;  %v714_v63 = vld [vmem:[#allocation11 + $0x50] sm:$0xff]  ;;  %v715_v3 = vld [vmem:[#allocation11 + $0x58] sm:$0xff]  ;;  %v740_v27 = vld [vmem:[#allocation11 + $0x120] sm:$0xff] }
 0x138   :  { %v361_v47 = vsel %vm355_vm7, %v352_v4, %v354_v46  ;;  %1994 = vmatprep.subr.bf16.mxu1 %v1993_v29  ;;  %v732_v4 = vld [vmem:[#allocation11 + $0xe0] sm:$0xff]  ;;  %v741_v29 = vld [vmem:[#allocation11 + $0x128] sm:$0xff]  ;;  %v758_v38 = vld [vmem:[#allocation11 + $0x1b0] sm:$0xff]  ;;  %vm1655_vm7 = vcmask 1024  }
 0x139   :  { %1978 = vmatprep.subr.bf16.mxu0 %v1977_v45  ;;  %v2003_v45 = vpack.c.bf16 %v715_v3, %v714_v63  ;;  %v2023_v37 = vpack.c.bf16 %v741_v29, %v740_v27  ;;  %v759_v39 = vld [vmem:[#allocation11 + $0x1b8] sm:$0xff]  ;;  %v742_v63 = vld [vmem:[#allocation11 + $0x130] sm:$0xff] }
 0x13a   :  { %1980 = vmatpush1.bf16.msra.mxu0 %v1979_v44  ;;  %v733_v44 = vld [vmem:[#allocation11 + $0xe8] sm:$0xff]  ;;  %v743_v3 = vld [vmem:[#allocation11 + $0x138] sm:$0xff] }
 0x13b   :  { %537 = vmatprep.subr.mxu0 %v361_v47  ;;  %1996 = vmatpush3.bf16.msra.mxu1 %v1995_v42  ;;  %v2005_v46 = vpack.c.bf16 %v733_v44, %v732_v4  ;;  %v716_v47 = vld [vmem:[#allocation11 + $0x60] sm:$0xff]  ;;  %v2027_v4 = vpack.c.bf16 %v743_v3, %v742_v63 }
 0x13c   :  { %1998 = vmatprep.subr.bf16.mxu1 %v1997_v31  ;;  %v772_v3 = vld [vmem:[#allocation11 + $0x220] sm:$0xff] }
 0x13e   :  { %538 = vmatpush1.msra.mxu0 %v360_v28  ;;  %v717_v28 = vld [vmem:[#allocation11 + $0x68] sm:$0xff] }
 0x13f   :  { %1667 = vmatmul.mubr.msk.f32.vlgmr.msra.gmra.mrb[2].mxu0 %vm375_vm8, %v2830_v56  ;;  %2000 = vmatpush3.bf16.msra.mxu1 %v1999_v43 }
 0x140   :  { %2002 = vmatprep.subr.bf16.mxu1 %v2001_v61  ;;  %v2025_v61 = vpack.c.bf16 %v759_v39, %v758_v38  ;;  %v788_v38 = vld [vmem:[#allocation11 + $0x2a0] sm:$0xff]  ;;  %v789_v39 = vld [vmem:[#allocation11 + $0x2a8] sm:$0xff] }
 0x141   :  { %v373_v32 = vpop.permute.xlu1 %372  ;;  %v2053_v63 = vpack.c.bf16 %v789_v39, %v788_v38 }
 0x143   :  { %2004 = vmatpush3.bf16.msra.mxu1 %v2003_v45  ;;  %v762_v45 = vld [vmem:[#allocation11 + $0x1d0] sm:$0xff] }
 0x144   :  { %2006 = vmatprep.subr.bf16.mxu1 %v2005_v46  ;;  %v763_v46 = vld [vmem:[#allocation11 + $0x1d8] sm:$0xff] }
 0x1f7   :  { %v445_v35 = vpop.f32.mrb[0].mxu0 }
 0x1f8   :  { %v447_v36 = vpop.f32.mrb[1].mxu0  ;;  %v2878_v48 = vadd.f32 %v445_v35, %v373_v32  ;;  %v2007_v35 = vpack.c.bf16 %v717_v28, %v716_v47  ;;  %v2033_v47 = vpack.c.bf16 %v763_v46, %v762_v45  ;;  %v746_v28 = vld [vmem:[#allocation11 + $0x150] sm:$0xff]  ;;  %v776_v46 = vld [vmem:[#allocation11 + $0x240] sm:$0xff] }
 0x1f9   :  { %v2880_v49 = vadd.f32 %v447_v36, %v373_v32  ;;  %v753_v36 = vld [vmem:[#allocation11 + $0x188] sm:$0xff] }
 0x1fa   :  { %v516_v50 = vpop.f32.mrb[0].mxu1  ;;  %v592_v55 = vmax.f32 %v2878_v48, 0.0  ;;  %2008 = vmatpush3.bf16.msra.mxu1 %v2007_v35  ;;  %v761_v48 = vld [vmem:[#allocation11 + $0x1c8] sm:$0xff] }
 0x1fb   :  { %v593_v51 = vmax.f32 %v2880_v49, 0.0  ;;  %v2883_v52 = vadd.f32 %v516_v50, %v373_v32  ;;  %v518_v53 = vpop.f32.mrb[1].mxu1  ;;  %v736_v50 = vld [vmem:[#allocation11 + $0x100] sm:$0xff] }
 0x1fc   :  { %v2885_v54 = vadd.f32 %v518_v53, %v373_v32  ;;  %v737_v53 = vld [vmem:[#allocation11 + $0x108] sm:$0xff] }
 0x1fd   :  { %v594_v57 = vmax.f32 %v2883_v52, 0.0  ;;  %v744_v52 = vld [vmem:[#allocation11 + $0x140] sm:$0xff] }
 0x1fe   :  { %v595_v56 = vmax.f32 %v2885_v54, 0.0 }
 0x1ff   :  { %v2272_v58 = vpack.i.bf16 %v594_v57, %v593_v51 }
 0x200   :  { %v2277_v59 = vpack.i.bf16 %v592_v55, %v595_v56 }
 0x201   :  { %2273 = vrot.lane.b32.xlu0 %v2272_v58, %s2513_s29 }
 0x202   :  { %2278 = vrot.lane.b32.xlu1 %v2277_v59, %s2513_s29  ;;  %v2015_v59 = vpack.c.bf16 %v737_v53, %v736_v50  ;;  %v765_v50 = vld [vmem:[#allocation11 + $0x1e8] sm:$0xff] }
 0x206   :  { %637 = vrot.lane.b32.xlu1 %v2520_v7, %s2513_s29 }
 0x212   :  { %v587_v60 = vpop.f32.mrb[2].mxu0 }
 0x213   :  { %v2902_v62 = vadd.f32 %v587_v60, %v373_v32  ;;  %v589_v0 = vpop.f32.mrb[3].mxu0  ;;  %v734_v60 = vld [vmem:[#allocation11 + $0xf0] sm:$0xff] }
 0x214   :  { %v2904_v1 = vadd.f32 %v589_v0, %v373_v32  ;;  %v752_v32 = vld [vmem:[#allocation11 + $0x180] sm:$0xff]  ;;  %v735_v0 = vld [vmem:[#allocation11 + $0xf8] sm:$0xff] }
 0x215   :  { %v596_v10 = vmax.f32 %v2902_v62, 0.0  ;;  %v2013_v58 = vpack.c.bf16 %v753_v36, %v752_v32  ;;  %v2009_v2 = vpack.c.bf16 %v735_v0, %v734_v60  ;;  %v747_v32 = vld [vmem:[#allocation11 + $0x158] sm:$0xff]  ;;  %v764_v36 = vld [vmem:[#allocation11 + $0x1e0] sm:$0xff]  ;;  %v766_v0 = vld [vmem:[#allocation11 + $0x1f0] sm:$0xff] }
 0x216   :  { %v597_v15 = vmax.f32 %v2904_v1, 0.0  ;;  %v2035_v35 = vpack.c.bf16 %v747_v32, %v746_v28  ;;  %v2037_v53 = vpack.c.bf16 %v765_v50, %v764_v36  ;;  %v794_v28 = vld [vmem:[#allocation11 + $0x2d0] sm:$0xff]  ;;  %v795_v32 = vld [vmem:[#allocation11 + $0x2d8] sm:$0xff] }
 0x217   :  { %2014 = vmatprep.subr.bf16.mxu0 %v2013_v58  ;;  %2010 = vmatprep.subr.bf16.mxu1 %v2009_v2  ;;  %v748_v58 = vld [vmem:[#allocation11 + $0x160] sm:$0xff]  ;;  %v767_v2 = vld [vmem:[#allocation11 + $0x1f8] sm:$0xff]  ;;  %v778_v36 = vld [vmem:[#allocation11 + $0x250] sm:$0xff]  ;;  %v2065_v50 = vpack.c.bf16 %v795_v32, %v794_v28 }
 0x218   :  { %v2282_v25 = vpack.i.bf16 %v597_v15, %v596_v10  ;;  %2016 = vmatpush3.bf16.msra.mxu0 %v2015_v59  ;;  %2012 = vmatpush3.bf16.msra.mxu1 %v2011_v12  ;;  %v749_v59 = vld [vmem:[#allocation11 + $0x168] sm:$0xff]  ;;  %v2041_v6 = vpack.c.bf16 %v767_v2, %v766_v0  ;;  %v2043_v12 = vpack.c.bf16 %v751_v11, %v750_v9 }
 0x219   :  { %2018 = vmatprep.subr.bf16.mxu0 %v2017_v17  ;;  %2046 = vmatprep.subr.bf16.mxu1 %v2045_v22  ;;  %v2039_v60 = vpack.c.bf16 %v749_v59, %v748_v58  ;;  %v796_v58 = vld [vmem:[#allocation11 + $0x2e0] sm:$0xff]  ;;  %v797_v59 = vld [vmem:[#allocation11 + $0x2e8] sm:$0xff] }
 0x21a   :  { %2283 = vrot.lane.b32.xlu0 %v2282_v25, %s2513_s29  ;;  %v756_v25 = vld [vmem:[#allocation11 + $0x1a0] sm:$0xff] }
 0x21b   :  { %v2021_v8 = vpack.c.bf16 %v757_v5, %v756_v25 }
 0x21c   :  { %2020 = vmatpush3.bf16.msra.mxu0 %v2019_v18 }
 0x21d   :  { %2022 = vmatprep.subr.bf16.mxu0 %v2021_v8 }
 0x220   :  { %2024 = vmatpush3.bf16.msra.mxu0 %v2023_v37 }
 0x221   :  { %2026 = vmatprep.subr.bf16.mxu0 %v2025_v61 }
 0x224   :  { %2028 = vmatpush3.bf16.msra.mxu0 %v2027_v4  ;;  %v773_v4 = vld [vmem:[#allocation11 + $0x228] sm:$0xff] }
 0x273   :  { %v2274_v21 = vpop.permute.xlu0 %2273 }
 0x274   :  { %v2276_v23 = vunpack.i.h.bf16 %v2274_v21  ;;  %v2275_v24 = vunpack.i.l.bf16 %v2274_v21  ;;  %v2913_v26 = vpop.permute.xlu1 %2278 }
 0x275   :  { %v2281_v30 = vunpack.i.h.bf16 %v2913_v26  ;;  %v2280_v33 = vunpack.i.l.bf16 %v2913_v26  ;;  %v787_v26 = vld [vmem:[#allocation11 + $0x298] sm:$0xff] }
 0x276   :  { %v640_v41 = vsel %vm166_vm0, %v2275_v24, %v2276_v23 }
 0x277   :  { %v641_v42 = vsel %vm166_vm0, %v2276_v23, %v2280_v33  ;;  %v639_v31 = vsel %vm166_vm0, %v2281_v30, %v2275_v24  ;;  %v2922_v34 = vmax.f32 %v593_v51, %v640_v41  ;;  %v760_v51 = vld [vmem:[#allocation11 + $0x1c0] sm:$0xff]  ;;  %v769_v24 = vld [vmem:[#allocation11 + $0x208] sm:$0xff] }
 0x278   :  { %v2926_v40 = vmax.f32 %v592_v55, %v639_v31  ;;  %v2930_v43 = vmax.f32 %v594_v57, %v641_v42  ;;  %v2029_v55 = vpack.c.bf16 %v761_v48, %v760_v51  ;;  %v745_v57 = vld [vmem:[#allocation11 + $0x148] sm:$0xff]  ;;  %v638_v13 = vpop.permute.xlu1 %637  ;;  %v770_v42 = vld [vmem:[#allocation11 + $0x210] sm:$0xff]  ;;  %v771_v31 = vld [vmem:[#allocation11 + $0x218] sm:$0xff] }
 0x279   :  { %v2031_v44 = vpack.c.bf16 %v745_v57, %v744_v52  ;;  %v664_v18 = vmax.f32 %v638_v13, 0.0  ;;  %v2051_v61 = vpack.c.bf16 %v771_v31, %v770_v42  ;;  %v791_v51 = vld [vmem:[#allocation11 + $0x2b8] sm:$0xff]  ;;  %v774_v48 = vld [vmem:[#allocation11 + $0x230] sm:$0xff]  ;;  %v792_v52 = vld [vmem:[#allocation11 + $0x2c0] sm:$0xff] }
 0x27a   :  { %672 = vrot.lane.b32.xlu1 %v2926_v40, %s2515_s15  ;;  %v2287_v49 = vpack.i.bf16 %v2930_v43, %v2922_v34  ;;  %2030 = vmatprep.subr.bf16.mxu0 %v2029_v55  ;;  %v775_v55 = vld [vmem:[#allocation11 + $0x238] sm:$0xff]  ;;  %v793_v57 = vld [vmem:[#allocation11 + $0x2c8] sm:$0xff] }
 0x27b   :  { %2032 = vmatpush3.bf16.msra.mxu0 %v2031_v44  ;;  %v2059_v44 = vpack.c.bf16 %v775_v55, %v774_v48  ;;  %v2061_v45 = vpack.c.bf16 %v793_v57, %v792_v52  ;;  %v1088_v48 = vld [vmem:[%s3138_s4] sm:$0xf] }
 0x27c   :  { %2288 = vrot.lane.b32.xlu0 %v2287_v49, %s2515_s15  ;;  %2034 = vmatprep.subr.bf16.mxu0 %v2033_v47  ;;  %v790_v49 = vld [vmem:[#allocation11 + $0x2b0] sm:$0xff]  ;;  %v777_v47 = vld [vmem:[#allocation11 + $0x248] sm:$0xff] }
 0x27f   :  { %2036 = vmatpush3.bf16.msra.mxu0 %v2035_v35  ;;  %v2063_v35 = vpack.c.bf16 %v777_v47, %v776_v46 }
 0x280   :  { %2038 = vmatprep.subr.bf16.mxu0 %v2037_v53  ;;  %v779_v53 = vld [vmem:[#allocation11 + $0x258] sm:$0xff] }
 0x281   :  { %v2067_v2 = vpack.c.bf16 %v779_v53, %v778_v36 }
 0x283   :  { %2040 = vmatpush3.bf16.msra.mxu0 %v2039_v60 }
 0x284   :  { %2042 = vmatprep.subr.bf16.mxu0 %v2041_v6  ;;  %v2069_v6 = vpack.c.bf16 %v797_v59, %v796_v58 }
 0x287   :  { %2044 = vmatpush3.bf16.msra.mxu0 %v2043_v12 }
 0x28c   :  { %v2284_v14 = vpop.permute.xlu0 %2283 }
 0x28d   :  { %v2286_v16 = vunpack.i.h.bf16 %v2284_v14  ;;  %v2285_v17 = vunpack.i.l.bf16 %v2284_v14  ;;  %v780_v14 = vld [vmem:[#allocation11 + $0x260] sm:$0xff] }
 0x28f   :  { %v642_v19 = vsel %vm166_vm0, %v2280_v33, %v2285_v17  ;;  %v643_v20 = vsel %vm166_vm0, %v2285_v17, %v2286_v16  ;;  %v644_v22 = vsel %vm166_vm0, %v2286_v16, %v638_v13  ;;  %v781_v16 = vld [vmem:[#allocation11 + $0x268] sm:$0xff]  ;;  %v798_v17 = vld [vmem:[#allocation11 + $0x2f0] sm:$0xff] }
 0x290   :  { %v2942_v25 = vmax.f32 %v597_v15, %v644_v22  ;;  %v2946_v5 = vmax.f32 %v595_v56, %v642_v19  ;;  %v2950_v21 = vmax.f32 %v596_v10, %v643_v20  ;;  %v768_v56 = vld [vmem:[#allocation11 + $0x200] sm:$0xff]  ;;  %v786_v10 = vld [vmem:[#allocation11 + $0x290] sm:$0xff] }
 0x291   :  { %v2047_v37 = vpack.c.bf16 %v769_v24, %v768_v56  ;;  %v2049_v41 = vpack.c.bf16 %v787_v26, %v786_v10  ;;  %v2071_v56 = vpack.c.bf16 %v781_v16, %v780_v14  ;;  %v783_v10 = vld [vmem:[#allocation11 + $0x278] sm:$0xff] }
 0x292   :  { %v2297_v8 = vpack.i.bf16 %v664_v18, %v2942_v25  ;;  %v2292_v23 = vpack.i.bf16 %v2950_v21, %v2946_v5  ;;  %v799_v18 = vld [vmem:[#allocation11 + $0x2f8] sm:$0xff] }
 0x293   :  { %v2073_v24 = vpack.c.bf16 %v799_v18, %v798_v17 }
 0x294   :  { %2298 = vrot.lane.b32.xlu1 %v2297_v8, %s2515_s15  ;;  %2293 = vrot.lane.b32.xlu0 %v2292_v23, %s2515_s15 }
 0x2ec   :  { %v673_v62 = vpop.permute.xlu1 %672 }
 0x2ee   :  { %v2957_v1 = vpop.permute.xlu0 %2288 }
 0x2ef   :  { %v2291_v15 = vunpack.i.h.bf16 %v2957_v1  ;;  %v2290_v54 = vunpack.i.l.bf16 %v2957_v1 }
 0x2f1   :  { %v686_v27 = vsel %vm220_vm2, %v673_v62, %v2290_v54  ;;  %v687_v29 = vsel %vm220_vm2, %v2290_v54, %v2291_v15  ;;  %v782_v62 = vld [vmem:[#allocation11 + $0x270] sm:$0xff] }
 0x2f2   :  { %v698_v30 = vmax.f32 %v2926_v40, %v686_v27  ;;  %v699_v33 = vmax.f32 %v2922_v34, %v687_v29  ;;  %v2055_v40 = vpack.c.bf16 %v773_v4, %v772_v3  ;;  %v2057_v34 = vpack.c.bf16 %v791_v51, %v790_v49 }
 0x2f3   :  { %v2075_v1 = vpack.c.bf16 %v783_v10, %v782_v62  ;;  %v2523_v49 = vmov 0.0|0.0  }
 0x2f4   :  { %864 = vmatprep.mubr.f32.mxu1 %v699_v33  ;;  %2077 = vmatprep.subr.bf16.mxu0 %v2523_v49 }
 0x2f5   :  { %865 = vmatmul.mubr.f32.vlgmr.msra.gmra.mrb[2].mxu1 %v698_v30 }
 0x2f6   :  { %2048 = vmatpush3.bf16.msra.mxu1 %v2047_v37 }
 0x2f7   :  { %2050 = vmatprep.subr.bf16.mxu1 %v2049_v41 }
 0x2fa   :  { %2052 = vmatpush3.bf16.msra.mxu1 %v2051_v61 }
 0x2fb   :  { %2054 = vmatprep.subr.bf16.mxu1 %v2053_v63 }
 0x2fe   :  { %2056 = vmatpush3.bf16.msra.mxu1 %v2055_v40 }
 0x2ff   :  { %2058 = vmatprep.subr.bf16.mxu1 %v2057_v34 }
 0x302   :  { %2060 = vmatpush3.bf16.msra.mxu1 %v2059_v44 }
 0x303   :  { %2062 = vmatprep.subr.bf16.mxu1 %v2061_v45 }
 0x306   :  { %2064 = vmatpush3.bf16.msra.mxu1 %v2063_v35  ;;  %v2299_v60 = vpop.permute.xlu1 %2298  ;;  %v2294_v0 = vpop.permute.xlu0 %2293 }
 0x307   :  { %v2301_v9 = vunpack.i.h.bf16 %v2299_v60  ;;  %v2300_v11 = vunpack.i.l.bf16 %v2299_v60  ;;  %v2296_v12 = vunpack.i.h.bf16 %v2294_v0  ;;  %v2295_v13 = vunpack.i.l.bf16 %v2294_v0  ;;  %2066 = vmatprep.subr.bf16.mxu1 %v2065_v50 }
 0x309   :  { %v688_v19 = vsel %vm220_vm2, %v2291_v15, %v2295_v13  ;;  %v689_v20 = vsel %vm220_vm2, %v2295_v13, %v2296_v12  ;;  %v691_v22 = vsel %vm220_vm2, %v2300_v11, %v2301_v9  ;;  %v690_v15 = vsel %vm220_vm2, %v2296_v12, %v2300_v11 }
 0x30a   :  { %v700_v8 = vmax.f32 %v2930_v43, %v688_v19  ;;  %2068 = vmatpush3.bf16.msra.mxu1 %v2067_v2  ;;  %v701_v23 = vmax.f32 %v2946_v5, %v689_v20  ;;  %v703_v54 = vmax.f32 %v2942_v25, %v691_v22  ;;  %v702_v43 = vmax.f32 %v2950_v21, %v690_v15 }
 0x30b   :  { %2070 = vmatprep.subr.bf16.mxu1 %v2069_v6 }
 0x30c   :  { %934 = vmatprep.mubr.f32.mxu0 %v701_v23  ;;  %1004 = vmatprep.mubr.f32.mxu1 %v703_v54 }
 0x30d   :  { %935 = vmatmul.mubr.f32.vlgmr.msra.gmra.mrb[4].mxu0 %v700_v8 }
 0x30e   :  { %2072 = vmatpush3.bf16.msra.mxu1 %v2071_v56  ;;  %1849 = vmatprep.mubr.msk.f32.mxu0 %vm2528_vm9, %v2520_v7 }
 0x30f   :  { %2074 = vmatprep.subr.bf16.mxu1 %v2073_v24  ;;  %v1087_v24 = vld [vmem:[#allocation10] sm:$0xf] }
 0x312   :  { %2076 = vmatpush3.bf16.msra.mxu1 %v2075_v1 }
 0x313   :  { %2089 = vmatprep.subr.bf16.mxu1 %v2523_v49 }
 0x315   :  { %1005 = vmatmul.mubr.f32.vlgmr.msra.gmra.mrb[4].mxu1 %v702_v43 }
 0x316   :  { %1884 = vmatprep.mubr.msk.f32.mxu1 %vm2528_vm9, %v2520_v7 }
 0x3c8   :  { %v1710_v5 = vpop.f32.mrb[2].mxu1 }
 0x3c9   :  { %v1711_v26 = vpop.f32.mrb[3].mxu1 }
 0x3ca   :  { %v1712_v25 = vadd.f32 %v1711_v26, %v1710_v5  ;;  %v1187_v26 = vld [vmem:[%s3140_s6] sm:$0xff] }
 0x3e0   :  { %v1745_v27 = vpop.f32.mrb[4].mxu0 }
 0x3e1   :  { %v1746_v29 = vpop.f32.mrb[5].mxu0 }
 0x3e2   :  { %v1747_v30 = vadd.f32 %v1746_v29, %v1745_v27  ;;  %v1189_v27 = vld [vmem:[%s3140_s6 + $0x10] sm:$0xff] }
 0x3e4   :  { %v937_v33 = vadd.f32 %v1747_v30, %v1712_v25  ;;  %v1188_v25 = vld [vmem:[%s3140_s6 + $0x8] sm:$0xff]  ;;  %v1190_v30 = vld [vmem:[%s3140_s6 + $0x18] sm:$0xff] }
 0x3e5   :  { %v2090_v29 = vpack.c.bf16 %v1188_v25, %v1187_v26  ;;  %v1407_v25 = vld [vmem:[#allocation14] sm:$0xff] }
 0x3e7   :  { %2091 = vmatpush3.bf16.msra.mxu1 %v2090_v29 }
 0x3e8   :  { %v1780_v37 = vpop.f32.mrb[4].mxu1  ;;  %2092 = vmatprep.subr.bf16.mxu1 %v2523_v49 }
 0x3e9   :  { %v1781_v41 = vpop.f32.mrb[5].mxu1 }
 0x3ea   :  { %v1782_v42 = vadd.f32 %v1781_v41, %v1780_v37  ;;  %v1191_v37 = vld [vmem:[%s3140_s6 + $0x20] sm:$0xff]  ;;  %v1192_v41 = vld [vmem:[%s3140_s6 + $0x28] sm:$0xff] }
 0x3ec   :  { %v1007_v31 = vadd.f32 %v1782_v42, %v937_v33  ;;  %v2093_v33 = vpack.c.bf16 %v1190_v30, %v1189_v27  ;;  %v1408_v27 = vld [vmem:[#allocation14 + $0x8] sm:$0xff] }
 0x3ed   :  { %v2120_v29 = vpack.c.bf16 %v1408_v27, %v1407_v25 }
 0x3ee   :  { %1015 = vadd.xlane.f32.xlu0 %v1007_v31  ;;  %2094 = vmatpush3.bf16.msra.mxu1 %v2093_v33  ;;  %v1409_v33 = vld [vmem:[#allocation14 + $0x10] sm:$0xff] }
 0x3ef   :  { %2095 = vmatprep.subr.bf16.mxu1 %v2523_v49 }
 0x47b   :  { %v1016_v38 = vpop.xlane.xlu0 %1015 }
 0x47c   :  { %v1017_v39 = vmul.f32 0.0078125, %v1016_v38  ;;  %v1193_v38 = vld [vmem:[%s3140_s6 + $0x30] sm:$0xff] }
 0x47e   :  { %v1018_v61 = vsub.f32 %v1007_v31, %v1017_v39  ;;  %v2096_v31 = vpack.c.bf16 %v1192_v41, %v1191_v37  ;;  %v1194_v39 = vld [vmem:[%s3140_s6 + $0x38] sm:$0xff]  ;;  %v1410_v37 = vld [vmem:[#allocation14 + $0x18] sm:$0xff] }
 0x47f   :  { %v2123_v41 = vpack.c.bf16 %v1410_v37, %v1409_v33 }
 0x480   :  { %v1020_v63 = vmul.f32 %v1018_v61, %v1018_v61  ;;  %2097 = vmatpush3.bf16.msra.mxu1 %v2096_v31  ;;  %v1493_v31 = vld [vmem:[%s3145_s11] sm:$0xff] }
 0x481   :  { %2098 = vmatprep.subr.bf16.mxu1 %v2523_v49 }
 0x482   :  { %1021 = vadd.xlane.f32.xlu1 %v1020_v63  ;;  %v1195_v63 = vld [vmem:[%s3140_s6 + $0x40] sm:$0xff] }
 0x50f   :  { %v1022_v3 = vpop.xlane.xlu1 %1021 }
 0x510   :  { %v1023_v21 = vmul.f32 0.0078125, %v1022_v3  ;;  %v1196_v3 = vld [vmem:[%s3140_s6 + $0x48] sm:$0xff] }
 0x512   :  { %v1024_v4 = vadd.f32 1e-05, %v1023_v21  ;;  %v2102_v21 = vpack.c.bf16 %v1196_v3, %v1195_v63 }
 0x514   :  { %2338 = vrsqrt.f32 %v1024_v4  ;;  %v1197_v4 = vld [vmem:[%s3140_s6 + $0x50] sm:$0xff] }
 0x51e   :  { %v2339_v51 = vpop.eup %2338 }
 0x51f   :  { %v1026_v40 = vmul.f32 %v2339_v51, %v1018_v61  ;;  %v2099_v61 = vpack.c.bf16 %v1194_v39, %v1193_v38  ;;  %v1198_v51 = vld [vmem:[%s3140_s6 + $0x58] sm:$0xff]  ;;  %v1494_v38 = vld [vmem:[%s3145_s11 + $0x8] sm:$0xff] }
 0x520   :  { %v2126_v3 = vpack.c.bf16 %v1494_v38, %v1493_v31 }
 0x521   :  { %v2307_v34 = vpack.i.bf16 %v2520_v7, %v1026_v40  ;;  %2100 = vmatpush3.bf16.msra.mxu1 %v2099_v61 }
 0x522   :  { %2101 = vmatprep.subr.bf16.mxu1 %v2523_v49 }
 0x523   :  { %2308 = vrot.lane.b32.xlu1 %v2307_v34, %s2514_s10  ;;  %2303 = vrot.lane.b32.xlu0 %v2307_v34, %s2513_s29 }
 0x525   :  { %2103 = vmatpush3.bf16.msra.mxu1 %v2102_v21 }
 0x526   :  { %2104 = vmatprep.subr.bf16.mxu1 %v2523_v49 }
 0x527   :  { %2318 = vrot.lane.b32.xlu1 %v2307_v34, %s2524_s2  ;;  %2313 = vrot.lane.b32.xlu0 %v2307_v34, %s2525_s5 }
 0x52b   :  { %2328 = vrot.lane.b32.xlu1 %v2307_v34, %s2526_s16  ;;  %2323 = vrot.lane.b32.xlu0 %v2307_v34, %s2527_s20  ;;  %s2530_s16 = smov 9   ;;  %s2531_s20 = smov 27  }
 0x52f   :  { %1081 = vrot.lane.b32.xlu1 %v1026_v40, %s2515_s15  ;;  %2333 = vrot.lane.b32.xlu0 %v2307_v34, %s2529_s21  ;;  %v1199_v34 = vld [vmem:[%s3140_s6 + $0x60] sm:$0xff] }
 0x533   :  { %1091 = vperm.xlu1 %2271, %v1088_v48   ;;  %1083 = vrot.lane.b32.xlu0 %v2520_v7, %s2515_s15  ;;  %v1200_v48 = vld [vmem:[%s3140_s6 + $0x68] sm:$0xff] }
 0x595   :  { %v2309_v55 = vpop.permute.xlu1 %2308  ;;  %v2304_v52 = vpop.permute.xlu0 %2303 }
 0x596   :  { %v2306_v57 = vunpack.i.h.bf16 %v2304_v52  ;;  %v2305_v44 = vunpack.i.l.bf16 %v2304_v52  ;;  %v2311_v45 = vunpack.i.h.bf16 %v2309_v55  ;;  %v2310_v46 = vunpack.i.l.bf16 %v2309_v55  ;;  %v1201_v52 = vld [vmem:[%s3140_s6 + $0x70] sm:$0xff] }
 0x597   :  { %v2108_v55 = vpack.c.bf16 %v1200_v48, %v1199_v34  ;;  %v1673_v34 = vld [vmem:[#allocation16] ss:$0 sm:$0xff]  ;;  %v1578_v48 = vld [vmem:[%s3147_s13] sm:$0xff] }
 0x598   :  { %v1038_v47 = vsel %vm166_vm0, %v2305_v44, %v2306_v57  ;;  %v1044_v53 = vsel %vm193_vm1, %v2310_v46, %v2311_v45  ;;  %v1202_v57 = vld [vmem:[%s3140_s6 + $0x78] sm:$0xff]  ;;  %vm1291_vm1 = vcmask 65536  }
 0x599   :  { %v2078_v28 = vpack.c.bf16 %v1038_v47, %v1026_v40  ;;  %v2319_v32 = vpop.permute.xlu1 %2318  ;;  %v2314_v35 = vpop.permute.xlu0 %2313  ;;  %v2105_v40 = vpack.c.bf16 %v1198_v51, %v1197_v4  ;;  %v2111_v44 = vpack.c.bf16 %v1202_v57, %v1201_v52  ;;  %v1495_v4 = vld [vmem:[%s3145_s11 + $0x10] sm:$0xff]  ;;  %v1496_v51 = vld [vmem:[%s3145_s11 + $0x18] sm:$0xff] }
 0x59a   :  { %v2316_v36 = vunpack.i.h.bf16 %v2314_v35  ;;  %v2315_v50 = vunpack.i.l.bf16 %v2314_v35  ;;  %v2321_v58 = vunpack.i.h.bf16 %v2319_v32  ;;  %v2320_v59 = vunpack.i.l.bf16 %v2319_v32 }
 0x59b   :  { %2079 = vmatpush3.bf16.msra.mxu0 %v2078_v28  ;;  %2106 = vmatpush3.bf16.msra.mxu1 %v2105_v40  ;;  %v2129_v40 = vpack.c.bf16 %v1496_v51, %v1495_v4 }
 0x59c   :  { %v1051_v60 = vsel %vm1050_vm10, %v2315_v50, %v2316_v36  ;;  %2080 = vmatprep.subr.bf16.mxu0 %v2523_v49  ;;  %v1058_v12 = vsel %vm1057_vm11, %v2320_v59, %v2321_v58  ;;  %2107 = vmatprep.subr.bf16.mxu1 %v2523_v49 }
 0x59d   :  { %v2081_v0 = vpack.c.bf16 %v1051_v60, %v1044_v53  ;;  %v2329_v2 = vpop.permute.xlu1 %2328  ;;  %v2324_v6 = vpop.permute.xlu0 %2323 }
 0x59e   :  { %v2326_v9 = vunpack.i.h.bf16 %v2324_v6  ;;  %v2325_v11 = vunpack.i.l.bf16 %v2324_v6  ;;  %v2331_v13 = vunpack.i.h.bf16 %v2329_v2  ;;  %v2330_v14 = vunpack.i.l.bf16 %v2329_v2 }
 0x59f   :  { %2082 = vmatpush3.bf16.msra.mxu0 %v2081_v0  ;;  %2109 = vmatpush3.bf16.msra.mxu1 %v2108_v55  ;;  %v1010_v2 = vlaneseq  ;;  %v1579_v55 = vld [vmem:[%s3147_s13 + $0x8] sm:$0xff] }
 0x5a0   :  { %v1065_v16 = vsel %vm1064_vm12, %v2325_v11, %v2326_v9  ;;  %2083 = vmatprep.subr.bf16.mxu0 %v2523_v49  ;;  %v1072_v22 = vsel %vm1071_vm13, %v2330_v14, %v2331_v13  ;;  %2110 = vmatprep.subr.bf16.mxu1 %v2523_v49 }
 0x5a1   :  { %v2084_v17 = vpack.c.bf16 %v1065_v16, %v1058_v12  ;;  %v2334_v18 = vpop.permute.xlu0 %2333  ;;  %v1082_v56 = vpop.permute.xlu1 %1081  ;;  %v1011_v6 = vand.u32 127, %v1010_v2 }
 0x5a2   :  { %v2336_v19 = vunpack.i.h.bf16 %v2334_v18  ;;  %v2335_v20 = vunpack.i.l.bf16 %v2334_v18 }
 0x5a3   :  { %2085 = vmatpush3.bf16.msra.mxu0 %v2084_v17  ;;  %2112 = vmatpush3.bf16.msra.mxu1 %v2111_v44 }
 0x5a4   :  { %v1079_v8 = vsel %vm1078_vm14, %v2335_v20, %v2336_v19  ;;  %2086 = vmatprep.subr.bf16.mxu0 %v2523_v49 }
 0x5a5   :  { %v2087_v23 = vpack.c.bf16 %v1079_v8, %v1072_v22  ;;  %v1084_v54 = vpop.permute.xlu0 %1083  ;;  %v1317_v22 = vld [vmem:[%s3141_s7] sm:$0xff]  ;;  %v1318_v8 = vld [vmem:[%s3141_s7 + $0x8] sm:$0xff] }
 0x5a6   :  { %v1085_v62 = vsel %vm220_vm2, %v1082_v56, %v1084_v54  ;;  %v1319_v54 = vld [vmem:[%s3141_s7 + $0x10] sm:$0xff]  ;;  %v1320_v56 = vld [vmem:[%s3141_s7 + $0x18] sm:$0xff]  ;;  %vm1301_vm2 = vcmask 140361  }
 0x5a7   :  { %2088 = vmatpush3.bf16.msra.mxu0 %v2087_v23  ;;  %v2114_v23 = vpack.c.bf16 %v1318_v8, %v1317_v22 }
 0x5a8   :  { %1847 = vmatprep.subr.mxu0 %v2520_v7 }
 0x5ab   :  { %1848 = vmatpush3.msra.mxu0 %v1085_v62 }
 0x5ac   :  { %1850 = vmatmul.mubr.msk.f32.vlgmr.msra.gmra.mrb[6].mxu0 %vm375_vm8, %v1087_v24  ;;  %2113 = vmatprep.subr.bf16.mxu0 %v2523_v49  ;;  %v2117_v24 = vpack.c.bf16 %v1320_v56, %v1319_v54 }
 0x5ad   :  { %1897 = vmatprep.mubr.msk.f32.mxu0 %vm2528_vm9, %v2520_v7  ;;  %2115 = vmatpush3.bf16.msra.mxu0 %v2114_v23 }
 0x5ae   :  { %2116 = vmatprep.subr.bf16.mxu0 %v2523_v49 }
 0x5b1   :  { %2118 = vmatpush3.bf16.msra.mxu0 %v2117_v24 }
 0x5b2   :  { %v1092_v10 = vpop.permute.xlu1 %1091  ;;  %1895 = vmatprep.subr.mxu0 %v2520_v7 }
 0x67f   :  { %v1163_v1 = vpop.f32.mrb[6].mxu0 }
 0x680   :  { %v1164_v15 = vadd.f32 %v1163_v1, %v1092_v10  ;;  %v1851_v43 = vpop.f32.mrb[7].mxu0  ;;  %v1321_v1 = vld [vmem:[%s3141_s7 + $0x20] sm:$0xf] }
 0x681   :  { %1896 = vmatpush3.msk.msra.mxu0 %vm1276_vm15, %v1321_v1 }
 0x682   :  { %v1167_v5 = vmax.f32 %v1164_v15, 0.0  ;;  %2119 = vmatprep.subr.bf16.mxu0 %v2523_v49 }
 0x684   :  { %1168 = vst [vmem:[#allocation4] sm:$0xf] %v1167_v5 }
 0x68b   :  { %v1171_v42 = vld [vmem:[#allocation4] sm:$0xff] }
 0x68c   :  { %1173 = vrot.lane.b32.xlu0 %v1171_v42, %s2513_s29  ;;  %v1170_v35 = vld [vmem:[#allocation4] sm:$0xf]  ;;  %s2532_s29 = smov 18  }
 0x6fe   :  { %v1174_v45 = vpop.permute.xlu0 %1173 }
 0x6ff   :  { %v1175_v46 = vrot.slane %v1174_v45, 4 }
 0x701   :  { %v1176_v47 = vsel %vm166_vm0, %v1174_v45, %v1175_v46  ;;  %vm1273_vm0 = vcmp.lt.s32.totalorder %v1011_v6, 18  ;;  %v2132_v45 = vpack.c.bf16 %v1579_v55, %v1578_v48 }
 0x702   :  { %v1179_v28 = vmax.f32 %v1171_v42, %v1176_v47  ;;  %v1178_v50 = vmax.f32 %v1170_v35, %v1176_v47  ;;  %v1669_v12 = vsel %vm1273_vm0, 1.0, %v2520_v7  ;;  %v1670_v42 = vld [vmem:[#allocation13] ss:$0 sm:$0xff]  ;;  %v1580_v47 = vld [vmem:[%s3147_s13 + $0x10] sm:$0xff]  ;;  %v1675_v35 = vld [vmem:[%s3146_s12] ss:$0 sm:$0xff] }
 0x704   :  { %1181 = vrot.lane.b32.xlu1 %v1179_v28, %s2525_s5  ;;  %v1581_v28 = vld [vmem:[%s3147_s13 + $0x18] sm:$0xff] }
 0x776   :  { %v1182_v32 = vpop.permute.xlu1 %1181 }
 0x777   :  { %v1183_v36 = vrot.slane %v1182_v32, 4 }
 0x779   :  { %v1184_v53 = vsel %vm1050_vm10, %v1182_v32, %v1183_v36  ;;  %v2135_v32 = vpack.c.bf16 %v1581_v28, %v1580_v47 }
 0x77a   :  { %v1186_v58 = vmax.f32 %v1178_v50, %v1184_v53 }
 0x77c   :  { %1885 = vmatmul.mubr.f32.vlgmr.msra.gmra.mrb[6].mxu1 %v1186_v58 }
 0x84f   :  { %v1269_v59 = vpop.f32.mrb[6].mxu1 }
 0x850   :  { %v1886_v60 = vpop.f32.mrb[7].mxu1  ;;  %v1277_v0 = vsel %vm1276_vm15, %v1269_v59, 0.0 }
 0x851   :  { %1278 = vadd.xlane.f32.xlu0 %v1277_v0 }
 0x8de   :  { %v1279_v9 = vpop.xlane.xlu0 %1278 }
 0x8df   :  { %v1280_v11 = vmul.f32 0.055555556, %v1279_v9 }
 0x8e1   :  { %v1281_v13 = vsub.f32 %v1269_v59, %v1280_v11 }
 0x8e3   :  { %v1282_v14 = vmul.f32 %v1669_v12, %v1281_v13 }
 0x8e5   :  { %v1283_v16 = vmul.f32 %v1282_v14, %v1282_v14 }
 0x8e7   :  { %v1284_v17 = vsel %vm1276_vm15, %v1283_v16, 0.0 }
 0x8e8   :  { %1285 = vadd.xlane.f32.xlu1 %v1284_v17 }
 0x975   :  { %v1286_v18 = vpop.xlane.xlu1 %1285 }
 0x976   :  { %v1287_v19 = vmul.f32 0.055555556, %v1286_v18 }
 0x978   :  { %v1288_v20 = vadd.f32 1e-05, %v1287_v19 }
 0x97a   :  { %2340 = vrsqrt.f32 %v1288_v20 }
 0x984   :  { %v2341_v62 = vpop.eup %2340 }
 0x985   :  { %v1290_v10 = vmul.f32 %v2341_v62, %v1281_v13 }
 0x987   :  { %1298 = vrot.lane.b32.xlu1 %v1290_v10, %s2530_s16  ;;  %1294 = vrot.lane.b32.xlu0 %v1290_v10, %s2524_s2  ;;  %1292 = vst.msk [vmem:[#allocation5] sm:$0x1] %vm1291_vm1, %v1290_v10 }
 0x98b   :  { %1310 = vrot.lane.b32.xlu1 %v1290_v10, %s2531_s20  ;;  %1304 = vrot.lane.b32.xlu0 %v1290_v10, %s2532_s29 }
 0x9f9   :  { %v1299_v15 = vpop.permute.xlu1 %1298  ;;  %v1295_v43 = vpop.permute.xlu0 %1294 }
 0x9fa   :  { %1302 = vst.msk [vmem:[#allocation5 - $0x1] sm:$0x2] %vm1301_vm2, %v1299_v15 }
 0x9fb   :  { %1297 = vst.msk [vmem:[#allocation5 + $0x1] sm:$0x1] %vm1291_vm1, %v1295_v43 }
 0x9fc   :  { %1303 = vst.msk [vmem:[#allocation5] sm:$0x2] %vm1301_vm2, %v1290_v10 }
 0x9fd   :  { %1309 = vst.msk [vmem:[#allocation5 - $0x1] sm:$0x4] %vm1307_vm3, %v1299_v15  ;;  %v1311_v5 = vpop.permute.xlu1 %1310  ;;  %v1305_v26 = vpop.permute.xlu0 %1304 }
 0x9fe   :  { %1308 = vst.msk [vmem:[#allocation5 - $0x2] sm:$0x4] %vm1307_vm3, %v1305_v26 }
 0x9ff   :  { %1315 = vst.msk [vmem:[#allocation5 - $0x2] sm:$0x8] %vm1313_vm4, %v1305_v26  ;;  %1314 = vst.msk [vmem:[#allocation5 - $0x3] sm:$0x8] %vm1313_vm4, %v1311_v5 }
 0xa06   :  { %v1316_v30 = vld [vmem:[#allocation5] sm:$0x3] }
 0xa07   :  { %1898 = vmatmul.mubr.msk.f32.vlgmr.msra.gmra.mrb[8].mxu0 %vm1329_vm5, %v1316_v30 }
 0xa08   :  { %2121 = vmatpush3.bf16.msra.mxu0 %v2120_v29  ;;  %1908 = vmatprep.mubr.msk.f32.mxu0 %vm2528_vm9, %v2520_v7 }
 0xa09   :  { %2122 = vmatprep.subr.bf16.mxu0 %v2523_v49 }
 0xa0c   :  { %2124 = vmatpush3.bf16.msra.mxu0 %v2123_v41 }
 0xa0d   :  { %2125 = vmatprep.subr.bf16.mxu0 %v2523_v49 }
 0xada   :  { %v1402_v39 = vpop.f32.mrb[8].mxu0 }
 0xadb   :  { %v1403_v61 = vadd.f32 %v1670_v42, %v1402_v39  ;;  %v1899_v63 = vpop.f32.mrb[9].mxu0 }
 0xadd   :  { %v1406_v21 = vmax.f32 %v1403_v61, 0.0 }
 0xadf   :  { %1909 = vmatmul.mubr.msk.f32.vlgmr.msra.gmra.mrb[10].mxu0 %vm1418_vm6, %v1406_v21 }
 0xae0   :  { %2127 = vmatpush3.bf16.msra.mxu0 %v2126_v3  ;;  %1919 = vmatprep.mubr.msk.f32.mxu0 %vm2528_vm9, %v2520_v7 }
 0xae1   :  { %2128 = vmatprep.subr.bf16.mxu0 %v2523_v49 }
 0xae4   :  { %2130 = vmatpush3.bf16.msra.mxu0 %v2129_v40 }
 0xae5   :  { %2131 = vmatprep.subr.bf16.mxu0 %v2523_v49 }
 0xbb2   :  { %v1488_v52 = vpop.f32.mrb[10].mxu0 }
 0xbb3   :  { %v1489_v57 = vadd.f32 %v1673_v34, %v1488_v52  ;;  %v1910_v44 = vpop.f32.mrb[11].mxu0 }
 0xbb5   :  { %v1492_v46 = vmax.f32 %v1489_v57, 0.0 }
 0xbb7   :  { %1920 = vmatmul.mubr.msk.f32.vlgmr.msra.gmra.mrb[12].mxu0 %vm1418_vm6, %v1492_v46 }
 0xbb8   :  { %2133 = vmatpush3.bf16.msra.mxu0 %v2132_v45  ;;  %1930 = vmatprep.mubr.msk.f32.mxu0 %vm2528_vm9, %v2520_v7 }
 0xbb9   :  { %2134 = vmatprep.subr.bf16.mxu0 %v2523_v49 }
 0xbbc   :  { %2136 = vmatpush3.bf16.msra.mxu0 %v2135_v32 }
 0xc8a   :  { %v1573_v36 = vpop.f32.mrb[12].mxu0 }
 0xc8b   :  { %v1574_v50 = vadd.f32 %v1675_v35, %v1573_v36  ;;  %v1921_v53 = vpop.f32.mrb[13].mxu0 }
 0xc8d   :  { %v1577_v7 = vmax.f32 %v1574_v50, 0.0 }
 0xc8f   :  { %1931 = vmatmul.mubr.msk.f32.vlgmr.msra.gmra.mrb[14].mxu0 %vm1418_vm6, %v1577_v7 }
 0xd62   :  { %v1651_v49 = vpop.f32.mrb[14].mxu0 }
 0xd63   :  { %1656 = vst.msk [vmem:[%s3148_s14] sm:$0x3] %vm1655_vm7, %v1651_v49  ;;  %v1932_v58 = vpop.f32.mrb[15].mxu0 }
 0xd64   :  { %1661 = vsyncpa [#allocation7], 1 }
 0xd65   :  { %1662 = vsyncpa [#allocation9], 1 }
 0xd66   :  { %1663 = vsyncpa [#allocation12], 1 }
 0xd67   :  { %1664 = vsyncpa [#allocation15], 1 }

</bundles_post_ra>
